<compile_context>
chip_gen: v7x
topology: tpu7x:2x2x1
jax: 0.10.0
libtpu: 0.0.40
codegen_flags: <defaults>
</compile_context>

<pallas_src>
import functools

import jax
import jax.numpy as jnp
from jax import lax
from jax.experimental import pallas as pl
from jax.experimental.pallas import tpu as pltpu


_NEG_BIG = -1e30


def _round_up(x, m):
    return ((x + m - 1) // m) * m


def _supcon_kernel(labr_ref, labc_ref, fa_ref, fc_ref, out_ref,
                   m_sc, s_sc, p_sc, c_sc, *,
                   m_valid, n_valid, inv_temp, loss_scale,
                   block_m, block_n, out_lanes):
    # labr_ref: [TM, 1] int32 labels for the anchor rows of this tile
    # labc_ref: [1, TN] int32 labels for the contrast columns of this tile
    # fa_ref  : [TM, D] bf16 anchor features
    # fc_ref  : [TN, D] bf16 contrast features
    # out_ref : [1, out_lanes] f32 per-row-tile partial loss (lane-dense)
    # scratch : running max / sum-exp / sum(mask*logits) / sum(mask), each [TM, 1] f32
    i = pl.program_id(0)
    j = pl.program_id(1)

    @pl.when(j == 0)
    def _init():
        m_sc[...] = jnp.full_like(m_sc, _NEG_BIG)
        s_sc[...] = jnp.zeros_like(s_sc)
        p_sc[...] = jnp.zeros_like(p_sc)
        c_sc[...] = jnp.zeros_like(c_sc)

    # [TM, TN] similarity tile on the MXU: bf16 x bf16 -> f32 accumulation,
    # contracting the last axis of both operands (no explicit transpose).
    logits = lax.dot_general(
        fa_ref[...], fc_ref[...],
        dimension_numbers=(((1,), (1,)), ((), ())),
        preferred_element_type=jnp.float32) * inv_temp

    # Per-tile index bookkeeping (O(TM*TN), never M x N).
    row_ids = i * block_m + lax.broadcasted_iota(jnp.int32, (block_m, 1), 0)
    col_ids = j * block_n + lax.broadcasted_iota(jnp.int32, (1, block_n), 1)
    col_valid = col_ids < n_valid                      # [1, TN] (padding columns)
    not_diag = row_ids != col_ids                      # [TM, TN] (self-contrast)
    keep = jnp.logical_and(not_diag, col_valid)        # logits_mask tile
    keep_f = keep.astype(jnp.float32)

    # Positive-pair mask built from labels in-kernel (no M x N mask from HBM).
    pos_f = jnp.logical_and(labr_ref[...] == labc_ref[...], keep).astype(jnp.float32)

    # Online log-sum-exp across column tiles.  Row max is over all valid
    # columns (diagonal included), exactly like the reference.
    m_prev = m_sc[...]
    tile_max = jnp.max(jnp.where(col_valid, logits, _NEG_BIG),
                       axis=1, keepdims=True)
    m_new = jnp.maximum(m_prev, tile_max)
    alpha = jnp.exp(m_prev - m_new)
    s_sc[...] = s_sc[...] * alpha + jnp.sum(jnp.exp(logits - m_new) * keep_f,
                                            axis=1, keepdims=True)
    # Sum(mask * logits) stays in (unshifted) logit space -> no exp rescaling.
    p_sc[...] = p_sc[...] + jnp.sum(pos_f * logits, axis=1, keepdims=True)
    c_sc[...] = c_sc[...] + jnp.sum(pos_f, axis=1, keepdims=True)
    m_sc[...] = m_new

    @pl.when(j == pl.num_programs(1) - 1)
    def _finalize():
        m = m_sc[...]                                  # [TM, 1]
        log_z = jnp.log(s_sc[...] + 0.001)             # once per row tile
        cnt = c_sc[...]
        # sum(mask * log_prob) = P - C*M - C*logZ
        mean_log_prob_pos = (p_sc[...] - cnt * (m + log_z)) * pl.reciprocal(
            cnt + 0.001, approx=True)
        loss_rows = loss_scale * mean_log_prob_pos     # [TM, 1]
        row_valid = row_ids < m_valid
        partial = jnp.sum(jnp.where(row_valid, loss_rows, 0.0))
        out_ref[...] = jnp.zeros((1, out_lanes), jnp.float32) + partial


def supcon_loss(features, labels=None, mask=None,
                temperature=0.07, base_temperature=0.07,
                contrast_mode="all", block_size=None):
    """JAX/Pallas equivalent of SupConLoss.forward (contrast_mode 'all'/'one')."""
    if features.ndim < 3:
        raise ValueError("`features` needs to be [bsz, n_views, ...], "
                         "at least 3 dimensions are required")

    bsz, n_views = features.shape[0], features.shape[1]
    feats = features.reshape(bsz, n_views, -1)
    d = feats.shape[-1]

    if labels is not None and mask is not None:
        raise ValueError("Cannot define both `labels` and `mask`")
    if mask is not None:
        # TODO(synk): arbitrary dense `mask` input needs an N x N mask stream; only
        # the `labels` / identity-mask paths are implemented in the tiled kernel.
        raise NotImplementedError("explicit `mask` not supported; pass `labels`")
    if labels is not None:
        labels = jnp.asarray(labels).reshape(-1)
        if labels.shape[0] != bsz:
            raise ValueError("Num of labels does not match num of features")
        base_labels = labels.astype(jnp.int32)
    else:
        # eye(bsz) mask == label-equality of unique per-sample ids
        base_labels = jnp.arange(bsz, dtype=jnp.int32)

    n = bsz * n_views
    # torch.cat(torch.unbind(features, dim=1), dim=0) -> view-major [N, D]
    contrast = jnp.transpose(feats, (1, 0, 2)).reshape(n, d)
    lab_contrast = jnp.tile(base_labels, n_views)      # view-major labels [N]

    if contrast_mode == "all":
        m = n
        anchor = contrast
        lab_anchor = lab_contrast
    elif contrast_mode == "one":
        m = bsz
        anchor = contrast[:bsz]                        # == features[:, 0]
        lab_anchor = base_labels
    else:
        raise ValueError("Unknown mode: {}".format(contrast_mode))

    if block_size is None:
        block = 128 if _round_up(n, 128) <= 512 else 256
    else:
        block = int(block_size)
    m_pad = _round_up(m, block)
    n_pad = _round_up(n, block)

    # bf16 into the MXU (f32 accumulation): halves feature DMA, 2x MXU rate.
    feat_a = anchor.astype(jnp.bfloat16)
    feat_c = contrast.astype(jnp.bfloat16)
    if m_pad - m:
        feat_a = jnp.pad(feat_a, ((0, m_pad - m), (0, 0)))
        lab_anchor = jnp.pad(lab_anchor, (0, m_pad - m), constant_values=-1)
    if n_pad - n:
        feat_c = jnp.pad(feat_c, ((0, n_pad - n), (0, 0)))
        lab_contrast = jnp.pad(lab_contrast, (0, n_pad - n), constant_values=-1)

    lab_row = lab_anchor.reshape(m_pad, 1).astype(jnp.int32)
    lab_col = lab_contrast.reshape(1, n_pad).astype(jnp.int32)

    n_row_tiles = m_pad // block
    n_col_tiles = n_pad // block
    out_lanes = 128

    kernel = functools.partial(
        _supcon_kernel,
        m_valid=m, n_valid=n,
        inv_temp=float(1.0 / temperature),
        loss_scale=-(float(temperature) / float(base_temperature)),
        block_m=block, block_n=block, out_lanes=out_lanes)

    grid_spec = pltpu.PrefetchScalarGridSpec(
        num_scalar_prefetch=0,
        grid=(n_row_tiles, n_col_tiles),
        in_specs=[
            pl.BlockSpec((block, 1), lambda i, j: (i, 0)),     # anchor labels
            pl.BlockSpec((1, block), lambda i, j: (0, j)),     # contrast labels
            pl.BlockSpec((block, d), lambda i, j: (i, 0)),     # anchor rows
            pl.BlockSpec((block, d), lambda i, j: (j, 0)),     # contrast cols
        ],
        out_specs=pl.BlockSpec((1, out_lanes), lambda i, j: (0, i)),
        scratch_shapes=[pltpu.VMEM((block, 1), jnp.float32)] * 4,
    )

    cost = pl.CostEstimate(
        flops=2 * m_pad * n_pad * d,
        transcendentals=m_pad * n_pad,
        bytes_accessed=(m_pad * d * 2 + n_row_tiles * n_pad * d * 2
                        + (m_pad + n_pad) * 4 + n_row_tiles * out_lanes * 4))

    partials = pl.pallas_call(
        kernel,
        out_shape=jax.ShapeDtypeStruct((1, n_row_tiles * out_lanes), jnp.float32),
        grid_spec=grid_spec,
        compiler_params=pltpu.CompilerParams(
            dimension_semantics=("parallel", "arbitrary"),
            vmem_limit_bytes=32 * 1024 * 1024),
        cost_estimate=cost,
    )(lab_row, lab_col, feat_a, feat_c)

    # One scalar per row tile (broadcast across the 128 lanes); finish the mean.
    per_tile = partials.reshape(n_row_tiles, out_lanes)[:, 0]
    return jnp.sum(per_tile) / m


def _reference_supcon(features, labels=None, temperature=0.07,
                      base_temperature=0.07, contrast_mode="all"):
    """Pure-jnp reference matching the PyTorch module (bf16 matmul inputs to
    mirror the kernel's MXU precision)."""
    bsz, n_views = features.shape[0], features.shape[1]
    feats = features.reshape(bsz, n_views, -1).astype(jnp.float32)
    if labels is None:
        base_mask = jnp.eye(bsz, dtype=jnp.float32)
    else:
        labels = labels.reshape(-1, 1)
        base_mask = (labels == labels.T).astype(jnp.float32)
    cf = jnp.concatenate([feats[:, v] for v in range(n_views)], axis=0)
    cf_q = cf.astype(jnp.bfloat16).astype(jnp.float32)
    if contrast_mode == "one":
        anchor = cf_q[:bsz]
        anchor_count = 1
    else:
        anchor = cf_q
        anchor_count = n_views
    adc = jnp.matmul(anchor, cf_q.T) / temperature
    logits = adc - jnp.max(adc, axis=1, keepdims=True)
    n = bsz * n_views
    m_anch = anchor_count * bsz
    msk = jnp.tile(base_mask, (anchor_count, n_views))
    logits_mask = jnp.ones((m_anch, n), jnp.float32)
    logits_mask = logits_mask.at[jnp.arange(m_anch), jnp.arange(m_anch)].set(0.0)
    msk = msk * logits_mask
    exp_logits = jnp.exp(logits) * logits_mask
    log_prob = logits - jnp.log(jnp.sum(exp_logits, axis=1, keepdims=True) + 0.001)
    mlpp = jnp.sum(msk * log_prob, axis=1) / (jnp.sum(msk, axis=1) + 0.001)
    loss = -(temperature / base_temperature) * mlpp
    return jnp.mean(loss)


if __name__ == "__main__":
    key = jax.random.PRNGKey(0)
    k1, k2, k3 = jax.random.split(key, 3)

    # --- small case: bsz=4, n_views=2, dim=32 (single tile) -----------------
    bsz, n_views, dim = 4, 2, 32
    features = jax.random.normal(k1, (bsz, n_views, dim), dtype=jnp.float32)
    features = features / jnp.linalg.norm(features, axis=-1, keepdims=True)
    labels = jnp.array([0, 1, 0, 1], dtype=jnp.int32)

    # supervised (label-mask) path, contrast_mode='all'
    loss = jax.block_until_ready(supcon_loss(features, labels=labels))
    ref = jax.block_until_ready(_reference_supcon(features, labels=labels))
    assert jnp.allclose(loss, ref, rtol=1e-2, atol=1e-2), (loss, ref)

    # unsupervised (identity-mask) path
    loss_u = jax.block_until_ready(supcon_loss(features))
    ref_u = jax.block_until_ready(_reference_supcon(features, labels=None))
    assert jnp.allclose(loss_u, ref_u, rtol=1e-2, atol=1e-2), (loss_u, ref_u)

    # contrast_mode='one' (anchor = first view only)
    loss_1 = jax.block_until_ready(
        supcon_loss(features, labels=labels, contrast_mode="one"))
    ref_1 = jax.block_until_ready(
        _reference_supcon(features, labels=labels, contrast_mode="one"))
    assert jnp.allclose(loss_1, ref_1, rtol=1e-2, atol=1e-2), (loss_1, ref_1)

    # --- multi-tile case: exercises the online log-sum-exp across col tiles --
    bsz2, dim2 = 96, 32
    feat2 = jax.random.normal(k2, (bsz2, n_views, dim2), dtype=jnp.float32)
    feat2 = feat2 / jnp.linalg.norm(feat2, axis=-1, keepdims=True)
    labels2 = jax.random.randint(k3, (bsz2,), 0, 4, dtype=jnp.int32)

    loss_mt = jax.block_until_ready(supcon_loss(feat2, labels=labels2))
    ref_mt = jax.block_until_ready(_reference_supcon(feat2, labels=labels2))
    assert jnp.allclose(loss_mt, ref_mt, rtol=1e-2, atol=1e-2), (loss_mt, ref_mt)

    print("KERNEL_OK")
</pallas_src>

<mosaic_0001>
module attributes {stable_mosaic.version = 11 : i64} {
  func.func @_supcon_kernel(%arg0: i32, %arg1: i32, %arg2: memref<128x1xi32, #tpu.memory_space<vmem>>, %arg3: memref<1x128xi32, #tpu.memory_space<vmem>>, %arg4: memref<128x32xbf16, #tpu.memory_space<vmem>>, %arg5: memref<128x32xbf16, #tpu.memory_space<vmem>>, %arg6: memref<1x128xf32, #tpu.memory_space<vmem>>, %arg7: memref<128x1xf32, #tpu.memory_space<vmem>>, %arg8: memref<128x1xf32, #tpu.memory_space<vmem>>, %arg9: memref<128x1xf32, #tpu.memory_space<vmem>>, %arg10: memref<128x1xf32, #tpu.memory_space<vmem>>) attributes {dimension_semantics = [#tpu.dimension_semantics<parallel>, #tpu.dimension_semantics<arbitrary>], iteration_bounds = array<i64: 1, 1>, scalar_prefetch = 0 : i64, scratch_operands = 4 : i64, tpu.core_type = #tpu.core_type<tc>, window_params = [{transform_indices = @transform_0, window_bounds = array<i64: 128, 1>}, {transform_indices = @transform_1, window_bounds = array<i64: 1, 128>}, {transform_indices = @transform_2, window_bounds = array<i64: 128, 32>}, {transform_indices = @transform_3, window_bounds = array<i64: 128, 32>}, {transform_indices = @transform_4, window_bounds = array<i64: 1, 128>}]} {
    %c0_i32 = arith.constant 0 : i32
    %0 = arith.cmpi eq, %arg1, %c0_i32 : i32
    %1 = arith.extui %0 : i1 to i32
    %c0_i32_0 = arith.constant 0 : i32
    %2 = arith.cmpi ne, %1, %c0_i32_0 : i32
    scf.if %2 {
      %cst_33 = arith.constant -1.000000e+30 : f32
      %68 = vector.broadcast %cst_33 : f32 to vector<128x1xf32>
      %c0_34 = arith.constant 0 : index
      %c0_35 = arith.constant 0 : index
      %69 = vector.load %arg7[%c0_34, %c0_35] : memref<128x1xf32, #tpu.memory_space<vmem>>, vector<128x1xf32>
      tpu.vector_store %arg7[%c0_34, %c0_35], %68 {strides = array<i32>} : memref<128x1xf32, #tpu.memory_space<vmem>>, vector<128x1xf32>,
      %cst_36 = arith.constant 0.000000e+00 : f32
      %70 = vector.broadcast %cst_36 : f32 to vector<128x1xf32>
      %c0_37 = arith.constant 0 : index
      %c0_38 = arith.constant 0 : index
      %71 = vector.load %arg8[%c0_37, %c0_38] : memref<128x1xf32, #tpu.memory_space<vmem>>, vector<128x1xf32>
      tpu.vector_store %arg8[%c0_37, %c0_38], %70 {strides = array<i32>} : memref<128x1xf32, #tpu.memory_space<vmem>>, vector<128x1xf32>,
      %cst_39 = arith.constant 0.000000e+00 : f32
      %72 = vector.broadcast %cst_39 : f32 to vector<128x1xf32>
      %c0_40 = arith.constant 0 : index
      %c0_41 = arith.constant 0 : index
      %73 = vector.load %arg9[%c0_40, %c0_41] : memref<128x1xf32, #tpu.memory_space<vmem>>, vector<128x1xf32>
      tpu.vector_store %arg9[%c0_40, %c0_41], %72 {strides = array<i32>} : memref<128x1xf32, #tpu.memory_space<vmem>>, vector<128x1xf32>,
      %cst_42 = arith.constant 0.000000e+00 : f32
      %74 = vector.broadcast %cst_42 : f32 to vector<128x1xf32>
      %c0_43 = arith.constant 0 : index
      %c0_44 = arith.constant 0 : index
      %75 = vector.load %arg10[%c0_43, %c0_44] : memref<128x1xf32, #tpu.memory_space<vmem>>, vector<128x1xf32>
      tpu.vector_store %arg10[%c0_43, %c0_44], %74 {strides = array<i32>} : memref<128x1xf32, #tpu.memory_space<vmem>>, vector<128x1xf32>,
    } else {
    }
    %c0 = arith.constant 0 : index
    %c0_1 = arith.constant 0 : index
    %3 = vector.load %arg4[%c0, %c0_1] : memref<128x32xbf16, #tpu.memory_space<vmem>>, vector<128x32xbf16>
    %c0_2 = arith.constant 0 : index
    %c0_3 = arith.constant 0 : index
    %4 = vector.load %arg5[%c0_2, %c0_3] : memref<128x32xbf16, #tpu.memory_space<vmem>>, vector<128x32xbf16>
    %cst = arith.constant dense<0.000000e+00> : vector<128x128xf32>
    %5 = tpu.matmul %3, %4, %cst {dimension_numbers = #tpu.dot_dimension_numbers<[1], [1], [0], [0], [0, 0, 1, 0], [], []>} : vector<128x32xbf16>, vector<128x32xbf16>, vector<128x128xf32> -> vector<128x128xf32>
    %cst_4 = arith.constant 14.2857141 : f32
    %6 = vector.broadcast %cst_4 : f32 to vector<128x128xf32>
    %7 = arith.mulf %5, %6 : vector<128x128xf32>
    %c128_i32 = arith.constant 128 : i32
    %8 = arith.muli %arg0, %c128_i32 : i32
    %9 = tpu.iota {dimensions = array<i32: 0>} : vector<128x1xi32>
    %10 = vector.broadcast %8 : i32 to vector<128x1xi32>
    %11 = arith.addi %10, %9 : vector<128x1xi32>
    %c128_i32_5 = arith.constant 128 : i32
    %12 = arith.muli %arg1, %c128_i32_5 : i32
    %13 = tpu.iota {dimensions = array<i32: 1>} : vector<1x128xi32>
    %14 = vector.broadcast %12 : i32 to vector<1x128xi32>
    %15 = arith.addi %14, %13 : vector<1x128xi32>
    %c8_i32 = arith.constant 8 : i32
    %16 = vector.broadcast %c8_i32 : i32 to vector<1x128xi32>
    %17 = arith.cmpi slt, %15, %16 : vector<1x128xi32>
    %18 = vector.broadcast %11 : vector<128x1xi32> to vector<128x128xi32>
    %19 = vector.broadcast %15 : vector<1x128xi32> to vector<128x128xi32>
    %20 = arith.cmpi ne, %18, %19 : vector<128x128xi32>
    %21 = vector.broadcast %17 : vector<1x128xi1> to vector<128x128xi1>
    %22 = arith.andi %20, %21 : vector<128x128xi1>
    %23 = arith.extui %22 : vector<128x128xi1> to vector<128x128xi32>
    %24 = arith.sitofp %23 : vector<128x128xi32> to vector<128x128xf32>
    %c0_6 = arith.constant 0 : index
    %c0_7 = arith.constant 0 : index
    %25 = vector.load %arg2[%c0_6, %c0_7] : memref<128x1xi32, #tpu.memory_space<vmem>>, vector<128x1xi32>
    %c0_8 = arith.constant 0 : index
    %c0_9 = arith.constant 0 : index
    %26 = vector.load %arg3[%c0_8, %c0_9] : memref<1x128xi32, #tpu.memory_space<vmem>>, vector<1x128xi32>
    %27 = vector.broadcast %25 : vector<128x1xi32> to vector<128x128xi32>
    %28 = vector.broadcast %26 : vector<1x128xi32> to vector<128x128xi32>
    %29 = arith.cmpi eq, %27, %28 : vector<128x128xi32>
    %30 = arith.andi %29, %22 : vector<128x128xi1>
    %31 = arith.extui %30 : vector<128x128xi1> to vector<128x128xi32>
    %32 = arith.sitofp %31 : vector<128x128xi32> to vector<128x128xf32>
    %c0_10 = arith.constant 0 : index
    %c0_11 = arith.constant 0 : index
    %33 = vector.load %arg7[%c0_10, %c0_11] : memref<128x1xf32, #tpu.memory_space<vmem>>, vector<128x1xf32>
    %cst_12 = arith.constant -1.000000e+30 : f32
    %34 = vector.shape_cast %17 : vector<1x128xi1> to vector<1x128xi1>
    %35 = vector.broadcast %34 : vector<1x128xi1> to vector<128x128xi1>
    %36 = vector.broadcast %cst_12 : f32 to vector<128x128xf32>
    %37 = arith.select %35, %7, %36 : vector<128x128xi1>, vector<128x128xf32>
    %cst_13 = arith.constant dense<0xFF800000> : vector<128xf32>
    %38 = vector.multi_reduction <maximumf>, %37, %cst_13 [1] : vector<128x128xf32> to vector<128xf32>
    %39 = vector.shape_cast %38 : vector<128xf32> to vector<128x1xf32>
    %40 = arith.maximumf %33, %39 : vector<128x1xf32>
    %41 = arith.subf %33, %40 : vector<128x1xf32>
    %42 = math.exp %41 : vector<128x1xf32>
    %c0_14 = arith.constant 0 : index
    %c0_15 = arith.constant 0 : index
    %43 = vector.load %arg8[%c0_14, %c0_15] : memref<128x1xf32, #tpu.memory_space<vmem>>, vector<128x1xf32>
    %44 = arith.mulf %43, %42 : vector<128x1xf32>
    %45 = vector.broadcast %40 : vector<128x1xf32> to vector<128x128xf32>
    %46 = arith.subf %7, %45 : vector<128x128xf32>
    %47 = math.exp %46 : vector<128x128xf32>
    %48 = arith.mulf %47, %24 : vector<128x128xf32>
    %cst_16 = arith.constant dense<0.000000e+00> : vector<128xf32>
    %49 = vector.multi_reduction <add>, %48, %cst_16 [1] : vector<128x128xf32> to vector<128xf32>
    %50 = vector.shape_cast %49 : vector<128xf32> to vector<128x1xf32>
    %51 = arith.addf %44, %50 : vector<128x1xf32>
    %c0_17 = arith.constant 0 : index
    %c0_18 = arith.constant 0 : index
    %52 = vector.load %arg8[%c0_17, %c0_18] : memref<128x1xf32, #tpu.memory_space<vmem>>, vector<128x1xf32>
    tpu.vector_store %arg8[%c0_17, %c0_18], %51 {strides = array<i32>} : memref<128x1xf32, #tpu.memory_space<vmem>>, vector<128x1xf32>,
    %c0_19 = arith.constant 0 : index
    %c0_20 = arith.constant 0 : index
    %53 = vector.load %arg9[%c0_19, %c0_20] : memref<128x1xf32, #tpu.memory_space<vmem>>, vector<128x1xf32>
    %54 = arith.mulf %32, %7 : vector<128x128xf32>
    %cst_21 = arith.constant dense<0.000000e+00> : vector<128xf32>
    %55 = vector.multi_reduction <add>, %54, %cst_21 [1] : vector<128x128xf32> to vector<128xf32>
    %56 = vector.shape_cast %55 : vector<128xf32> to vector<128x1xf32>
    %57 = arith.addf %53, %56 : vector<128x1xf32>
    %c0_22 = arith.constant 0 : index
    %c0_23 = arith.constant 0 : index
    %58 = vector.load %arg9[%c0_22, %c0_23] : memref<128x1xf32, #tpu.memory_space<vmem>>, vector<128x1xf32>
    tpu.vector_store %arg9[%c0_22, %c0_23], %57 {strides = array<i32>} : memref<128x1xf32, #tpu.memory_space<vmem>>, vector<128x1xf32>,
    %c0_24 = arith.constant 0 : index
    %c0_25 = arith.constant 0 : index
    %59 = vector.load %arg10[%c0_24, %c0_25] : memref<128x1xf32, #tpu.memory_space<vmem>>, vector<128x1xf32>
    %cst_26 = arith.constant dense<0.000000e+00> : vector<128xf32>
    %60 = vector.multi_reduction <add>, %32, %cst_26 [1] : vector<128x128xf32> to vector<128xf32>
    %61 = vector.shape_cast %60 : vector<128xf32> to vector<128x1xf32>
    %62 = arith.addf %59, %61 : vector<128x1xf32>
    %c0_27 = arith.constant 0 : index
    %c0_28 = arith.constant 0 : index
    %63 = vector.load %arg10[%c0_27, %c0_28] : memref<128x1xf32, #tpu.memory_space<vmem>>, vector<128x1xf32>
    tpu.vector_store %arg10[%c0_27, %c0_28], %62 {strides = array<i32>} : memref<128x1xf32, #tpu.memory_space<vmem>>, vector<128x1xf32>,
    %c0_29 = arith.constant 0 : index
    %c0_30 = arith.constant 0 : index
    %64 = vector.load %arg7[%c0_29, %c0_30] : memref<128x1xf32, #tpu.memory_space<vmem>>, vector<128x1xf32>
    tpu.vector_store %arg7[%c0_29, %c0_30], %40 {strides = array<i32>} : memref<128x1xf32, #tpu.memory_space<vmem>>, vector<128x1xf32>,
    %c0_i32_31 = arith.constant 0 : i32
    %65 = arith.cmpi eq, %arg1, %c0_i32_31 : i32
    %66 = arith.extui %65 : i1 to i32
    %c0_i32_32 = arith.constant 0 : i32
    %67 = arith.cmpi ne, %66, %c0_i32_32 : i32
    scf.if %67 {
      %c0_33 = arith.constant 0 : index
      %c0_34 = arith.constant 0 : index
      %68 = vector.load %arg7[%c0_33, %c0_34] : memref<128x1xf32, #tpu.memory_space<vmem>>, vector<128x1xf32>
      %c0_35 = arith.constant 0 : index
      %c0_36 = arith.constant 0 : index
      %69 = vector.load %arg8[%c0_35, %c0_36] : memref<128x1xf32, #tpu.memory_space<vmem>>, vector<128x1xf32>
      %cst_37 = arith.constant 1.000000e-03 : f32
      %70 = vector.broadcast %cst_37 : f32 to vector<128x1xf32>
      %71 = arith.addf %69, %70 : vector<128x1xf32>
      %72 = math.log %71 : vector<128x1xf32>
      %c0_38 = arith.constant 0 : index
      %c0_39 = arith.constant 0 : index
      %73 = vector.load %arg10[%c0_38, %c0_39] : memref<128x1xf32, #tpu.memory_space<vmem>>, vector<128x1xf32>
      %c0_40 = arith.constant 0 : index
      %c0_41 = arith.constant 0 : index
      %74 = vector.load %arg9[%c0_40, %c0_41] : memref<128x1xf32, #tpu.memory_space<vmem>>, vector<128x1xf32>
      %75 = arith.addf %68, %72 : vector<128x1xf32>
      %76 = arith.mulf %73, %75 : vector<128x1xf32>
      %77 = arith.subf %74, %76 : vector<128x1xf32>
      %cst_42 = arith.constant 1.000000e-03 : f32
      %78 = vector.broadcast %cst_42 : f32 to vector<128x1xf32>
      %79 = arith.addf %73, %78 : vector<128x1xf32>
      %80 = tpu.reciprocal %79 {approx = true} : vector<128x1xf32> -> vector<128x1xf32>
      %81 = arith.mulf %77, %80 : vector<128x1xf32>
      %cst_43 = arith.constant -1.000000e+00 : f32
      %82 = vector.broadcast %cst_43 : f32 to vector<128x1xf32>
      %83 = arith.mulf %82, %81 : vector<128x1xf32>
      %c8_i32_44 = arith.constant 8 : i32
      %84 = vector.broadcast %c8_i32_44 : i32 to vector<128x1xi32>
      %85 = arith.cmpi slt, %11, %84 : vector<128x1xi32>
      %cst_45 = arith.constant 0.000000e+00 : f32
      %86 = vector.broadcast %cst_45 : f32 to vector<128x1xf32>
      %87 = arith.select %85, %83, %86 : vector<128x1xi1>, vector<128x1xf32>
      %88 = vector.shape_cast %87 : vector<128x1xf32> to vector<1x128x1xf32>
      %cst_46 = arith.constant dense<0.000000e+00> : vector<1xf32>
      %89 = vector.multi_reduction <add>, %88, %cst_46 [1, 2] : vector<1x128x1xf32> to vector<1xf32>
      %90 = vector.shape_cast %89 : vector<1xf32> to vector<1x1x1xf32>
      %91 = vector.extract %90[0, 0, 0] : f32 from vector<1x1x1xf32>
      %cst_47 = arith.constant 0.000000e+00 : f32
      %92 = vector.broadcast %cst_47 : f32 to vector<1x128xf32>
      %93 = vector.broadcast %91 : f32 to vector<1x128xf32>
      %94 = arith.addf %92, %93 : vector<1x128xf32>
      %c0_48 = arith.constant 0 : index
      %c0_49 = arith.constant 0 : index
      %95 = vector.load %arg6[%c0_48, %c0_49] : memref<1x128xf32, #tpu.memory_space<vmem>>, vector<1x128xf32>
      tpu.vector_store %arg6[%c0_48, %c0_49], %94 {strides = array<i32>} : memref<1x128xf32, #tpu.memory_space<vmem>>, vector<1x128xf32>,
    } else {
    }
    return
  }
  func.func @transform_0(%arg0: i32, %arg1: i32) -> (i32, i32) {
    %c0_i32 = arith.constant 0 : i32
    %c0_i32_0 = arith.constant 0 : i32
    return %arg0, %c0_i32 : i32, i32
  }
  func.func @transform_1(%arg0: i32, %arg1: i32) -> (i32, i32) {
    %c0_i32 = arith.constant 0 : i32
    %c0_i32_0 = arith.constant 0 : i32
    return %c0_i32, %arg1 : i32, i32
  }
  func.func @transform_2(%arg0: i32, %arg1: i32) -> (i32, i32) {
    %c0_i32 = arith.constant 0 : i32
    %c0_i32_0 = arith.constant 0 : i32
    return %arg0, %c0_i32 : i32, i32
  }
  func.func @transform_3(%arg0: i32, %arg1: i32) -> (i32, i32) {
    %c0_i32 = arith.constant 0 : i32
    %c0_i32_0 = arith.constant 0 : i32
    return %arg1, %c0_i32 : i32, i32
  }
  func.func @transform_4(%arg0: i32, %arg1: i32) -> (i32, i32) {
    %c0_i32 = arith.constant 0 : i32
    %c0_i32_0 = arith.constant 0 : i32
    return %c0_i32, %arg0 : i32, i32
  }
}

</mosaic_0001>

<bundles_post_ra>
// kernel: tpu_custom_call.1
= control target key start
LH: loop header
LB: loop body
LE: loop exit
PB: predicated region body
PF: predicated region fallthrough
CT: control target
= control target key end

     0   :  { %vm200_vm0 = vcmask 261120   ;;  %v1732_v3 = vmov 0   ;;  %s2715_s0 = inlined_call_operand.vmem [shape: s32[128,1], index: 0, kind: input, shape index: {}]   ;;  %s2716_s1 = inlined_call_operand.vmem [shape: s32[1,128], index: 1, kind: input, shape index: {}]   ;;  %s2717_s2 = inlined_call_operand.vmem [shape: bf16[128,32], index: 2, kind: input, shape index: {}]   ;;  %s2718_s3 = inlined_call_operand.vmem [shape: bf16[128,32], index: 3, kind: input, shape index: {}]   ;;  %s2719_s4 = inlined_call_operand.hbm [shape: f32[1,128], index: 4, kind: output, shape index: {}]  }
   0x1   :  { %v1624_v0 = vld [vmem:[%s2718_s3] sm:$0xff]   ;;  %v1625_v1 = vld [vmem:[%s2718_s3 + $0x8] sm:$0xff]   ;;  %1622 = vset.pattern.permute.xlu1 %v1732_v3  ;;  %1623 = vset.pattern.permute.xlu0 %v1732_v3  ;;  %v1626_v4 = vld [vmem:[%s2718_s3 + $0x10] sm:$0xff]  }
   0x2   :  { %1600 = vmatprep.subr.msk.bf16.mxu0 %vm200_vm0, %v1624_v0  ;;  %v226_v2 = vsel %vm200_vm0, %v1624_v0, 0  ;;  %1601 = vmatprep.subr.msk.bf16.mxu1 %vm200_vm0, %v1624_v0  ;;  %v229_v5 = vsel %vm200_vm0, %v1625_v1, 0  ;;  %v1632_v6 = vld [vmem:[%s2717_s2] sm:$0xff]   ;;  %v232_v8 = vsel %vm200_vm0, %v1626_v4, 0  ;;  %v1627_v9 = vld [vmem:[%s2718_s3 + $0x18] sm:$0xff]  }
   0x3   :  { %1553 = vmatpush3.bf16.xpose.msra.mxu0 %v226_v2  ;;  %1592 = vmatpush3.bf16.xpose.msra.mxu1 %v226_v2  ;;  %v1636_v7 = vld [vmem:[%s2717_s2 + $0x20] sm:$0xff]  }
   0x4   :  { %1602 = vmatprep.subr.msk.bf16.mxu0 %vm200_vm0, %v1625_v1  ;;  %1603 = vmatprep.subr.msk.bf16.mxu1 %vm200_vm0, %v1625_v1  ;;  %v469_v10 = vld [vmem:[%s2715_s0] sm:$0xff] }
   0x5   :  { %1568 = vmatprep.mubr.msk.bf16.mxu0 %vm200_vm0, %v1632_v6  ;;  %1576 = vmatprep.mubr.msk.bf16.mxu1 %vm200_vm0, %v1636_v7 }
   0xb   :  { %1555 = vmatpush3.bf16.xpose.msra.mxu0 %v229_v5  ;;  %1593 = vmatpush3.bf16.xpose.msra.mxu1 %v229_v5 }
   0xc   :  { %1604 = vmatprep.subr.msk.bf16.mxu0 %vm200_vm0, %v1626_v4  ;;  %1605 = vmatprep.subr.msk.bf16.mxu1 %vm200_vm0, %v1626_v4 }
   0xd   :  { %9 = vsyncpa [#allocation7], 0  ;;  %487 = vperm.xlu1 %1622, %v469_v10   ;;  %v235_v11 = vsel %vm200_vm0, %v1627_v9, 0  ;;  %v1628_v12 = vld [vmem:[%s2718_s3 + $0x20] sm:$0xff]   ;;  %v1629_v14 = vld [vmem:[%s2718_s3 + $0x28] sm:$0xff]   ;;  %v363_v26 = vlaneseq  ;;  %vm2750_vm2 = vcmask 7168  }
   0xe   :  { %v238_v13 = vsel %vm200_vm0, %v1628_v12, 0  ;;  %v241_v15 = vsel %vm200_vm0, %v1629_v14, 0  ;;  %v1630_v16 = vld [vmem:[%s2718_s3 + $0x30] sm:$0xff]   ;;  %v1631_v18 = vld [vmem:[%s2718_s3 + $0x38] sm:$0xff]   ;;  %v1633_v20 = vld [vmem:[%s2717_s2 + $0x8] sm:$0xff]   ;;  %v2720_v47 = vmov 0.0  }
   0xf   :  { %v244_v17 = vsel %vm200_vm0, %v1630_v16, 0  ;;  %v247_v19 = vsel %vm200_vm0, %v1631_v18, 0  ;;  %v1637_v21 = vld [vmem:[%s2717_s2 + $0x28] sm:$0xff]   ;;  %v1634_v22 = vld [vmem:[%s2717_s2 + $0x10] sm:$0xff]   ;;  %v1635_v24 = vld [vmem:[%s2717_s2 + $0x18] sm:$0xff]   ;;  %v1845_v27 = vand.u32 127, %v363_v26 }
  0x10   :  { %v1638_v23 = vld [vmem:[%s2717_s2 + $0x30] sm:$0xff]   ;;  %v1639_v25 = vld [vmem:[%s2717_s2 + $0x38] sm:$0xff]   ;;  %40 = vst.msk [vmem:[#allocation3] sm:$0xff] %vm2750_vm2, %v2720_v47  ;;  %41 = vst.msk [vmem:[#allocation3 + $0x8] sm:$0xff] %vm2750_vm2, %v2720_v47  ;;  %v1734_v50 = vmov -1e+30  }
  0x11   :  { %vm402_vm1 = vcmp.lt.s32.totalorder %v1845_v27, 8  ;;  %42 = vst.msk [vmem:[#allocation3 + $0x10] sm:$0xff] %vm2750_vm2, %v2720_v47  ;;  %43 = vst.msk [vmem:[#allocation3 + $0x18] sm:$0xff] %vm2750_vm2, %v2720_v47  ;;  %v2009_v55 = vshrl.u32 %v363_v26, 7  ;;  %v2020_v58 = vld [vmem:[%s2716_s1] ss:$0 sm:$0xff] }
  0x12   :  { %44 = vst.msk [vmem:[#allocation3 + $0x20] sm:$0xff] %vm2750_vm2, %v2720_v47  ;;  %45 = vst.msk [vmem:[#allocation3 + $0x28] sm:$0xff] %vm2750_vm2, %v2720_v47  ;;  %v470_v3 = vld [vmem:[%s2715_s0 + $0x8] sm:$0xff]  ;;  %v471_v5 = vld [vmem:[%s2715_s0 + $0x10] sm:$0xff] }
  0x13   :  { %1557 = vmatpush3.bf16.xpose.msra.mxu0 %v232_v8  ;;  %1594 = vmatpush3.bf16.xpose.msra.mxu1 %v232_v8  ;;  %46 = vst.msk [vmem:[#allocation3 + $0x30] sm:$0xff] %vm2750_vm2, %v2720_v47  ;;  %47 = vst.msk [vmem:[#allocation3 + $0x38] sm:$0xff] %vm2750_vm2, %v2720_v47  ;;  %vm403_vm3 = vcmp.ne.s32.totalorder %v2009_v55, %v1845_v27  ;;  %v472_v6 = vld [vmem:[%s2715_s0 + $0x18] sm:$0xff]  ;;  %v473_v7 = vld [vmem:[%s2715_s0 + $0x20] sm:$0xff] }
  0x14   :  { %1606 = vmatprep.subr.msk.bf16.mxu0 %vm200_vm0, %v1627_v9  ;;  %1607 = vmatprep.subr.msk.bf16.mxu1 %vm200_vm0, %v1627_v9  ;;  %48 = vst.msk [vmem:[#allocation3 + $0x40] sm:$0xff] %vm2750_vm2, %v2720_v47  ;;  %49 = vst.msk [vmem:[#allocation3 + $0x48] sm:$0xff] %vm2750_vm2, %v2720_v47  ;;  %v474_v8 = vld [vmem:[%s2715_s0 + $0x28] sm:$0xff] }
  0x15   :  { %50 = vst.msk [vmem:[#allocation3 + $0x50] sm:$0xff] %vm2750_vm2, %v2720_v47  ;;  %51 = vst.msk [vmem:[#allocation3 + $0x58] sm:$0xff] %vm2750_vm2, %v2720_v47 }
  0x16   :  { %52 = vst.msk [vmem:[#allocation3 + $0x60] sm:$0xff] %vm2750_vm2, %v2720_v47  ;;  %53 = vst.msk [vmem:[#allocation3 + $0x68] sm:$0xff] %vm2750_vm2, %v2720_v47 }
  0x17   :  { %54 = vst.msk [vmem:[#allocation3 + $0x70] sm:$0xff] %vm2750_vm2, %v2720_v47  ;;  %55 = vst.msk [vmem:[#allocation3 + $0x78] sm:$0xff] %vm2750_vm2, %v2720_v47 }
  0x18   :  { %56 = vst.msk [vmem:[#allocation4] sm:$0xff] %vm2750_vm2, %v2720_v47  ;;  %57 = vst.msk [vmem:[#allocation4 + $0x8] sm:$0xff] %vm2750_vm2, %v2720_v47 }
  0x19   :  { %58 = vst.msk [vmem:[#allocation4 + $0x10] sm:$0xff] %vm2750_vm2, %v2720_v47  ;;  %59 = vst.msk [vmem:[#allocation4 + $0x18] sm:$0xff] %vm2750_vm2, %v2720_v47 }
  0x1a   :  { %60 = vst.msk [vmem:[#allocation4 + $0x20] sm:$0xff] %vm2750_vm2, %v2720_v47  ;;  %61 = vst.msk [vmem:[#allocation4 + $0x28] sm:$0xff] %vm2750_vm2, %v2720_v47 }
  0x1b   :  { %1559 = vmatpush3.bf16.xpose.msra.mxu0 %v235_v11  ;;  %1595 = vmatpush3.bf16.xpose.msra.mxu1 %v235_v11  ;;  %62 = vst.msk [vmem:[#allocation4 + $0x30] sm:$0xff] %vm2750_vm2, %v2720_v47  ;;  %63 = vst.msk [vmem:[#allocation4 + $0x38] sm:$0xff] %vm2750_vm2, %v2720_v47  ;;  %v475_v11 = vld [vmem:[%s2715_s0 + $0x30] sm:$0xff] }
  0x1c   :  { %1608 = vmatprep.subr.msk.bf16.mxu0 %vm200_vm0, %v1628_v12  ;;  %1609 = vmatprep.subr.msk.bf16.mxu1 %vm200_vm0, %v1628_v12  ;;  %64 = vst.msk [vmem:[#allocation4 + $0x40] sm:$0xff] %vm2750_vm2, %v2720_v47  ;;  %65 = vst.msk [vmem:[#allocation4 + $0x48] sm:$0xff] %vm2750_vm2, %v2720_v47  ;;  %v476_v12 = vld [vmem:[%s2715_s0 + $0x38] sm:$0xff] }
  0x1d   :  { %66 = vst.msk [vmem:[#allocation4 + $0x50] sm:$0xff] %vm2750_vm2, %v2720_v47  ;;  %67 = vst.msk [vmem:[#allocation4 + $0x58] sm:$0xff] %vm2750_vm2, %v2720_v47 }
  0x1e   :  { %68 = vst.msk [vmem:[#allocation4 + $0x60] sm:$0xff] %vm2750_vm2, %v2720_v47  ;;  %69 = vst.msk [vmem:[#allocation4 + $0x68] sm:$0xff] %vm2750_vm2, %v2720_v47 }
  0x1f   :  { %70 = vst.msk [vmem:[#allocation4 + $0x70] sm:$0xff] %vm2750_vm2, %v2720_v47  ;;  %71 = vst.msk [vmem:[#allocation4 + $0x78] sm:$0xff] %vm2750_vm2, %v2720_v47 }
  0x20   :  { %72 = vst.msk [vmem:[#allocation5] sm:$0xff] %vm2750_vm2, %v2720_v47  ;;  %73 = vst.msk [vmem:[#allocation5 + $0x8] sm:$0xff] %vm2750_vm2, %v2720_v47 }
  0x21   :  { %74 = vst.msk [vmem:[#allocation5 + $0x10] sm:$0xff] %vm2750_vm2, %v2720_v47  ;;  %75 = vst.msk [vmem:[#allocation5 + $0x18] sm:$0xff] %vm2750_vm2, %v2720_v47 }
  0x22   :  { %76 = vst.msk [vmem:[#allocation5 + $0x20] sm:$0xff] %vm2750_vm2, %v2720_v47  ;;  %77 = vst.msk [vmem:[#allocation5 + $0x28] sm:$0xff] %vm2750_vm2, %v2720_v47 }
  0x23   :  { %1561 = vmatpush3.bf16.xpose.msra.mxu0 %v238_v13  ;;  %1596 = vmatpush3.bf16.xpose.msra.mxu1 %v238_v13  ;;  %78 = vst.msk [vmem:[#allocation5 + $0x30] sm:$0xff] %vm2750_vm2, %v2720_v47  ;;  %79 = vst.msk [vmem:[#allocation5 + $0x38] sm:$0xff] %vm2750_vm2, %v2720_v47  ;;  %v477_v13 = vld [vmem:[%s2715_s0 + $0x40] sm:$0xff] }
  0x24   :  { %1610 = vmatprep.subr.msk.bf16.mxu0 %vm200_vm0, %v1629_v14  ;;  %1611 = vmatprep.subr.msk.bf16.mxu1 %vm200_vm0, %v1629_v14  ;;  %80 = vst.msk [vmem:[#allocation5 + $0x40] sm:$0xff] %vm2750_vm2, %v2720_v47  ;;  %81 = vst.msk [vmem:[#allocation5 + $0x48] sm:$0xff] %vm2750_vm2, %v2720_v47  ;;  %v479_v14 = vld [vmem:[%s2715_s0 + $0x50] sm:$0xff] }
  0x25   :  { %82 = vst.msk [vmem:[#allocation5 + $0x50] sm:$0xff] %vm2750_vm2, %v2720_v47  ;;  %83 = vst.msk [vmem:[#allocation5 + $0x58] sm:$0xff] %vm2750_vm2, %v2720_v47 }
  0x26   :  { %84 = vst.msk [vmem:[#allocation5 + $0x60] sm:$0xff] %vm2750_vm2, %v2720_v47  ;;  %85 = vst.msk [vmem:[#allocation5 + $0x68] sm:$0xff] %vm2750_vm2, %v2720_v47 }
  0x27   :  { %86 = vst.msk [vmem:[#allocation5 + $0x70] sm:$0xff] %vm2750_vm2, %v2720_v47  ;;  %87 = vst.msk [vmem:[#allocation5 + $0x78] sm:$0xff] %vm2750_vm2, %v2720_v47 }
  0x28   :  { %24 = vst.msk [vmem:[#allocation2] sm:$0xff] %vm2750_vm2, %v1734_v50  ;;  %25 = vst.msk [vmem:[#allocation2 + $0x8] sm:$0xff] %vm2750_vm2, %v1734_v50 }
  0x29   :  { %26 = vst.msk [vmem:[#allocation2 + $0x10] sm:$0xff] %vm2750_vm2, %v1734_v50  ;;  %27 = vst.msk [vmem:[#allocation2 + $0x18] sm:$0xff] %vm2750_vm2, %v1734_v50 }
  0x2a   :  { %28 = vst.msk [vmem:[#allocation2 + $0x20] sm:$0xff] %vm2750_vm2, %v1734_v50  ;;  %29 = vst.msk [vmem:[#allocation2 + $0x28] sm:$0xff] %vm2750_vm2, %v1734_v50 }
  0x2b   :  { %1563 = vmatpush3.bf16.xpose.msra.mxu0 %v241_v15  ;;  %1597 = vmatpush3.bf16.xpose.msra.mxu1 %v241_v15  ;;  %30 = vst.msk [vmem:[#allocation2 + $0x30] sm:$0xff] %vm2750_vm2, %v1734_v50  ;;  %31 = vst.msk [vmem:[#allocation2 + $0x38] sm:$0xff] %vm2750_vm2, %v1734_v50  ;;  %v480_v15 = vld [vmem:[%s2715_s0 + $0x58] sm:$0xff] }
  0x2c   :  { %1612 = vmatprep.subr.msk.bf16.mxu0 %vm200_vm0, %v1630_v16  ;;  %1613 = vmatprep.subr.msk.bf16.mxu1 %vm200_vm0, %v1630_v16  ;;  %32 = vst.msk [vmem:[#allocation2 + $0x40] sm:$0xff] %vm2750_vm2, %v1734_v50  ;;  %33 = vst.msk [vmem:[#allocation2 + $0x48] sm:$0xff] %vm2750_vm2, %v1734_v50 }
  0x2d   :  { %34 = vst.msk [vmem:[#allocation2 + $0x50] sm:$0xff] %vm2750_vm2, %v1734_v50  ;;  %35 = vst.msk [vmem:[#allocation2 + $0x58] sm:$0xff] %vm2750_vm2, %v1734_v50 }
  0x2e   :  { %36 = vst.msk [vmem:[#allocation2 + $0x60] sm:$0xff] %vm2750_vm2, %v1734_v50  ;;  %37 = vst.msk [vmem:[#allocation2 + $0x68] sm:$0xff] %vm2750_vm2, %v1734_v50 }
  0x2f   :  { %38 = vst.msk [vmem:[#allocation2 + $0x70] sm:$0xff] %vm2750_vm2, %v1734_v50  ;;  %39 = vst.msk [vmem:[#allocation2 + $0x78] sm:$0xff] %vm2750_vm2, %v1734_v50  ;;  %v2085_v16 = vld [vmem:[#allocation2] sm:$0xff] }
  0x30   :  { %vm2026_vm4 = vmand %vm403_vm3, %vm402_vm1 }
  0x31   :  { %v2107_v26 = vld [vmem:[#allocation2 + $0x20] sm:$0xff] }
  0x32   :  { %2760 = vst [vmem:[#allocation11_spill] sm:$0xff] %v2107_v26 }
  0x33   :  { %1565 = vmatpush3.bf16.xpose.msra.mxu0 %v244_v17  ;;  %1598 = vmatpush3.bf16.xpose.msra.mxu1 %v244_v17 }
  0x34   :  { %1614 = vmatprep.subr.msk.bf16.mxu0 %vm200_vm0, %v1631_v18  ;;  %1615 = vmatprep.subr.msk.bf16.mxu1 %vm200_vm0, %v1631_v18  ;;  %v2087_v18 = vld [vmem:[#allocation2 + $0x8] sm:$0xff] }
  0x35   :  { %2758 = vst [vmem:[#allocation9_spill] sm:$0xff] %v2087_v18 }
  0x3b   :  { %1567 = vmatpush3.bf16.xpose.msra.mxu0 %v247_v19  ;;  %1599 = vmatpush3.bf16.xpose.msra.mxu1 %v247_v19 }
  0x42   :  { %1569 = vmatmul.mubr.msk.bf16.vlgmr.msra.gmra.mrb[0].mxu0 %vm200_vm0, %v1633_v20  ;;  %1577 = vmatmul.mubr.msk.bf16.vlgmr.msra.gmra.mrb[0].mxu1 %vm200_vm0, %v1637_v21 }
  0x43   :  { %1572 = vmatprep.mubr.msk.bf16.mxu0 %vm200_vm0, %v1634_v22  ;;  %1580 = vmatprep.mubr.msk.bf16.mxu1 %vm200_vm0, %v1638_v23  ;;  %v2100_v23 = vld [vmem:[#allocation2 + $0x10] sm:$0xff] }
  0x4a   :  { %1573 = vmatmul.mubr.msk.bf16.gmra.mrb[4].mxu0 %vm200_vm0, %v1635_v24  ;;  %1581 = vmatmul.mubr.msk.bf16.gmra.mrb[4].mxu1 %vm200_vm0, %v1639_v25 }
  0x8c   :  { %v488_v59 = vpop.permute.xlu1 %487 }
  0x8d   :  { %vm538_vm5 = vcmp.eq.s32.totalorder %v488_v59, %v2020_v58  ;;  %v971_v59 = vld [vmem:[#allocation4] sm:$0xff] }
  0x8e   :  { %vm554_vm6 = vmand %vm538_vm5, %vm2026_vm4 }
  0x8f   :  { %v2043_v0 = vsel %vm554_vm6, 1.0, %v2720_v47 }
 0x115   :  { %v1570_v28 = vpop.f32.mrb[0].mxu0  ;;  %v1847_v29 = vpop.f32.mrb[0].mxu1 }
 0x116   :  { %v283_v30 = vpop.f32.mrb[1].mxu0  ;;  %v1849_v31 = vpop.f32.mrb[1].mxu1  ;;  %v1865_v39 = vmul.f32 14.285714, %v1570_v28  ;;  %v2003_v53 = vmul.f32 14.285714, %v1847_v29 }
 0x117   :  { %v1851_v32 = vmul.f32 14.285714, %v283_v30  ;;  %v1853_v33 = vpop.f32.mrb[2].mxu0  ;;  %v1855_v34 = vpop.f32.mrb[2].mxu1  ;;  %v1997_v51 = vmul.f32 14.285714, %v1849_v31 }
 0x118   :  { %v286_v35 = vpop.f32.mrb[3].mxu0  ;;  %v1858_v36 = vpop.f32.mrb[3].mxu1  ;;  %v620_v45 = vsel %vm402_vm1, %v1865_v39, -1e+30  ;;  %v628_v57 = vsel %vm402_vm1, %v2003_v53, -1e+30 }
 0x119   :  { %v1860_v37 = vmul.f32 14.285714, %v286_v35  ;;  %v618_v38 = vsel %vm402_vm1, %v1851_v32, -1e+30  ;;  %v626_v54 = vsel %vm402_vm1, %v1997_v51, -1e+30  ;;  %v987_v1 = vmul.f32 %v2043_v0, %v1851_v32 }
 0x11a   :  { %634 = vmax.xlane.f32.xlu0 %v618_v38  ;;  %v2114_v30 = vld [vmem:[#allocation2 + $0x30] sm:$0xff]  ;;  %v2121_v38 = vld [vmem:[#allocation2 + $0x40] sm:$0xff] }
 0x11b   :  { %v619_v40 = vsel %vm402_vm1, %v1860_v37, -1e+30  ;;  %2762 = vst [vmem:[#allocation13_spill] sm:$0xff] %v2114_v30  ;;  %2764 = vst [vmem:[#allocation15_spill] sm:$0xff] %v2121_v38 }
 0x11c   :  { %636 = vmax.xlane.f32.xlu1 %v619_v40 }
 0x11d   :  { %v1574_v41 = vpop.f32.mrb[4].mxu0  ;;  %v1870_v42 = vpop.f32.mrb[4].mxu1 }
 0x11e   :  { %v299_v43 = vpop.f32.mrb[5].mxu0  ;;  %v1872_v44 = vpop.f32.mrb[5].mxu1  ;;  %v1975_v48 = vmul.f32 14.285714, %v1574_v41  ;;  %v2032_v61 = vmul.f32 14.285714, %v1870_v42 }
 0x11f   :  { %v1877_v46 = vmul.f32 14.285714, %v299_v43  ;;  %v2012_v56 = vmul.f32 14.285714, %v1872_v44  ;;  %v2047_v2 = vpop.f32.mrb[6].mxu0  ;;  %v2066_v9 = vpop.f32.mrb[6].mxu1 }
 0x120   :  { %638 = vmax.xlane.f32.xlu1 %v620_v45  ;;  %v624_v52 = vsel %vm402_vm1, %v1975_v48, -1e+30  ;;  %v632_v63 = vsel %vm402_vm1, %v2032_v61, -1e+30  ;;  %v2052_v4 = vpop.f32.mrb[7].mxu0  ;;  %v2068_v10 = vpop.f32.mrb[7].mxu1 }
 0x121   :  { %v622_v49 = vsel %vm402_vm1, %v1877_v46, -1e+30  ;;  %v630_v62 = vsel %vm402_vm1, %v2012_v56, -1e+30  ;;  %v2128_v42 = vld [vmem:[#allocation2 + $0x50] sm:$0xff]  ;;  %v2135_v45 = vld [vmem:[#allocation2 + $0x60] sm:$0xff] }
 0x122   :  { %2766 = vst [vmem:[#allocation17_spill] sm:$0xff] %v2128_v42  ;;  %2768 = vst [vmem:[#allocation19_spill] sm:$0xff] %v2135_v45 }
 0x124   :  { %642 = vmax.xlane.f32.xlu1 %v622_v49 }
 0x128   :  { %646 = vmax.xlane.f32.xlu1 %v624_v52  ;;  %v2142_v52 = vld [vmem:[#allocation2 + $0x70] sm:$0xff] }
 0x129   :  { %2770 = vst [vmem:[#allocation21_spill] sm:$0xff] %v2142_v52 }
 0x12c   :  { %650 = vmax.xlane.f32.xlu1 %v626_v54 }
 0x130   :  { %654 = vmax.xlane.f32.xlu1 %v628_v57 }
 0x134   :  { %658 = vmax.xlane.f32.xlu1 %v630_v62  ;;  %v2150_v62 = vmul.f32 14.285714, %v1853_v33  ;;  %v2163_v33 = vmul.f32 14.285714, %v2047_v2 }
 0x138   :  { %662 = vmax.xlane.f32.xlu1 %v632_v63 }
 0x13c   :  { %1003 = vadd.xlane.f32.xlu1 %v987_v1 }
 0x14d   :  { %490 = vperm.xlu1 %1622, %v470_v3   ;;  %v2157_v3 = vmul.f32 14.285714, %v2052_v4  ;;  %v625_v4 = vsel %vm402_vm1, %v2163_v33, -1e+30 }
 0x151   :  { %493 = vperm.xlu1 %1622, %v471_v5   ;;  %v621_v5 = vsel %vm402_vm1, %v2150_v62, -1e+30 }
 0x155   :  { %496 = vperm.xlu1 %1622, %v472_v6   ;;  %v623_v6 = vsel %vm402_vm1, %v2157_v3, -1e+30 }
 0x159   :  { %499 = vperm.xlu1 %1622, %v473_v7   ;;  %v2175_v7 = vmul.f32 14.285714, %v1855_v34 }
 0x15d   :  { %502 = vperm.xlu1 %1622, %v474_v8   ;;  %v2181_v8 = vmul.f32 14.285714, %v2068_v10  ;;  %v478_v10 = vld [vmem:[%s2715_s0 + $0x48] sm:$0xff] }
 0x15f   :  { %v631_v34 = vsel %vm402_vm1, %v2181_v8, -1e+30 }
 0x161   :  { %505 = vperm.xlu1 %1622, %v475_v11   ;;  %v2187_v11 = vmul.f32 14.285714, %v2066_v9  ;;  %v481_v9 = vld [vmem:[%s2715_s0 + $0x60] sm:$0xff] }
 0x165   :  { %508 = vperm.xlu1 %1622, %v476_v12   ;;  %v633_v12 = vsel %vm402_vm1, %v2187_v11, -1e+30 }
 0x169   :  { %511 = vperm.xlu1 %1622, %v477_v13  }
 0x16d   :  { %517 = vperm.xlu1 %1622, %v479_v14  }
 0x171   :  { %520 = vperm.xlu1 %1622, %v480_v15  }
 0x1a7   :  { %v635_v17 = vpop.xlane.xlu0 %634 }
 0x1a8   :  { %v2090_v19 = vmax.f32 %v2085_v16, %v635_v17  ;;  %v1503_v17 = vsel %vm2026_vm4, 1.0, %v2720_v47  ;;  %v730_v47 = vld [vmem:[#allocation3] sm:$0xff] }
 0x1a9   :  { %v637_v20 = vpop.xlane.xlu1 %636 }
 0x1aa   :  { %v682_v21 = vsub.f32 %v2085_v16, %v2090_v19  ;;  %1147 = vst.msk [vmem:[#allocation2] sm:$0xff] %vm2750_vm2, %v2090_v19  ;;  %v2097_v22 = vmax.f32 %v2087_v18, %v637_v20  ;;  %764 = vperm.xlu0 %1623, %v2090_v19  }
 0x1ac   :  { %2759 = vst [vmem:[#allocation10_spill] sm:$0xff] %v2097_v22  ;;  %1148 = vst.msk [vmem:[#allocation2 + $0x8] sm:$0xff] %vm2750_vm2, %v2097_v22 }
 0x1ad   :  { %v639_v24 = vpop.xlane.xlu1 %638 }
 0x1ae   :  { %v2105_v25 = vmax.f32 %v2100_v23, %v639_v24 }
 0x1b0   :  { %1149 = vst.msk [vmem:[#allocation2 + $0x10] sm:$0xff] %vm2750_vm2, %v2105_v25 }
 0x1b1   :  { %v643_v28 = vpop.xlane.xlu1 %642 }
 0x1b2   :  { %v2112_v29 = vmax.f32 %v2107_v26, %v643_v28  ;;  %v482_v28 = vld [vmem:[%s2715_s0 + $0x68] sm:$0xff] }
 0x1b4   :  { %2761 = vst [vmem:[#allocation12_spill] sm:$0xff] %v2112_v29  ;;  %1151 = vst.msk [vmem:[#allocation2 + $0x20] sm:$0xff] %vm2750_vm2, %v2112_v29 }
 0x1b5   :  { %v647_v31 = vpop.xlane.xlu1 %646 }
 0x1b6   :  { %v2119_v35 = vmax.f32 %v2114_v30, %v647_v31  ;;  %v1067_v31 = vld [vmem:[#allocation5] sm:$0xff] }
 0x1b8   :  { %2763 = vst [vmem:[#allocation14_spill] sm:$0xff] %v2119_v35  ;;  %1153 = vst.msk [vmem:[#allocation2 + $0x30] sm:$0xff] %vm2750_vm2, %v2119_v35 }
 0x1b9   :  { %v651_v40 = vpop.xlane.xlu1 %650 }
 0x1ba   :  { %v2126_v41 = vmax.f32 %v2121_v38, %v651_v40 }
 0x1bc   :  { %2765 = vst [vmem:[#allocation16_spill] sm:$0xff] %v2126_v41  ;;  %1155 = vst.msk [vmem:[#allocation2 + $0x40] sm:$0xff] %vm2750_vm2, %v2126_v41 }
 0x1bd   :  { %v655_v43 = vpop.xlane.xlu1 %654 }
 0x1be   :  { %v2133_v44 = vmax.f32 %v2128_v42, %v655_v43  ;;  %v2212_v43 = vld [vmem:[#allocation2 + $0x18] sm:$0xff]  ;;  %v1166_v42 = vld [vmem:[#allocation2] sm:$0xff] }
 0x1bf   :  { %2772 = vst [vmem:[#allocation23_spill] sm:$0xff] %v2212_v43 }
 0x1c0   :  { %2767 = vst [vmem:[#allocation18_spill] sm:$0xff] %v2133_v44  ;;  %1157 = vst.msk [vmem:[#allocation2 + $0x50] sm:$0xff] %vm2750_vm2, %v2133_v44 }
 0x1c1   :  { %v659_v49 = vpop.xlane.xlu1 %658 }
 0x1c2   :  { %v2140_v50 = vmax.f32 %v2135_v45, %v659_v49 }
 0x1c4   :  { %2769 = vst [vmem:[#allocation20_spill] sm:$0xff] %v2140_v50  ;;  %1159 = vst.msk [vmem:[#allocation2 + $0x60] sm:$0xff] %vm2750_vm2, %v2140_v50 }
 0x1c5   :  { %v663_v54 = vpop.xlane.xlu1 %662 }
 0x1c6   :  { %v2147_v57 = vmax.f32 %v2142_v52, %v663_v54  ;;  %v2219_v54 = vld [vmem:[#allocation2 + $0x28] sm:$0xff] }
 0x1c7   :  { %2774 = vst [vmem:[#allocation25_spill] sm:$0xff] %v2219_v54 }
 0x1c8   :  { %2771 = vst [vmem:[#allocation22_spill] sm:$0xff] %v2147_v57  ;;  %1161 = vst.msk [vmem:[#allocation2 + $0x70] sm:$0xff] %vm2750_vm2, %v2147_v57 }
 0x1c9   :  { %v1004_v63 = vpop.xlane.xlu1 %1003  ;;  %1083 = vadd.xlane.f32.xlu0 %v2043_v0  ;;  %v2169_v0 = vmul.f32 14.285714, %v1858_v36  ;;  %v629_v36 = vsel %vm402_vm1, %v2175_v7, -1e+30 }
 0x1ca   :  { %v1035_v1 = vadd.f32 %v1004_v63, %v971_v59 }
 0x1cb   :  { %v627_v2 = vsel %vm402_vm1, %v2169_v0, -1e+30 }
 0x1cc   :  { %1051 = vst.msk [vmem:[#allocation4] sm:$0xff] %vm2750_vm2, %v1035_v1 }
 0x1cd   :  { %640 = vmax.xlane.f32.xlu0 %v621_v5  ;;  %v2230_v5 = vld [vmem:[#allocation2 + $0x38] sm:$0xff] }
 0x1ce   :  { %2776 = vst [vmem:[#allocation27_spill] sm:$0xff] %v2230_v5 }
 0x1d1   :  { %644 = vmax.xlane.f32.xlu0 %v623_v6 }
 0x1d5   :  { %648 = vmax.xlane.f32.xlu0 %v625_v4 }
 0x1d9   :  { %652 = vmax.xlane.f32.xlu0 %v627_v2 }
 0x1dd   :  { %656 = vmax.xlane.f32.xlu0 %v629_v36  ;;  %v2241_v36 = vld [vmem:[#allocation2 + $0x48] sm:$0xff] }
 0x1de   :  { %2778 = vst [vmem:[#allocation29_spill] sm:$0xff] %v2241_v36 }
 0x1e1   :  { %660 = vmax.xlane.f32.xlu0 %v631_v34  ;;  %v698_v34 = vmul.f32 1.442695, %v682_v21 }
 0x1e5   :  { %664 = vmax.xlane.f32.xlu0 %v633_v12 }
 0x1fb   :  { %514 = vperm.xlu0 %1623, %v478_v10  }
 0x1ff   :  { %523 = vperm.xlu0 %1623, %v481_v9   ;;  %v2252_v9 = vld [vmem:[#allocation2 + $0x58] sm:$0xff] }
 0x200   :  { %2780 = vst [vmem:[#allocation31_spill] sm:$0xff] %v2252_v9 }
 0x203   :  { %769 = vperm.xlu0 %1623, %v2097_v22  }
 0x229   :  { %v765_v13 = vpop.permute.xlu0 %764 }
 0x22a   :  { %v842_v14 = vsub.f32 %v1851_v32, %v765_v13 }
 0x22c   :  { %v858_v15 = vmul.f32 1.442695, %v842_v14  ;;  %v483_v14 = vld [vmem:[%s2715_s0 + $0x70] sm:$0xff] }
 0x22e   :  { %1640 = vpow2.f32 %v858_v15 }
 0x22f   :  { %1642 = vpow2.f32 %v698_v34 }
 0x238   :  { %v1641_v20 = vpop.eup %1640 }
 0x239   :  { %v890_v24 = vmul.f32 %v1641_v20, %v1503_v17  ;;  %v2265_v20 = vld [vmem:[#allocation2 + $0x68] sm:$0xff] }
 0x23a   :  { %2782 = vst [vmem:[#allocation33_spill] sm:$0xff] %v2265_v20 }
 0x23b   :  { %906 = vadd.xlane.f32.xlu1 %v890_v24  ;;  %v1643_v24 = vpop.eup %1642 }
 0x24c   :  { %526 = vperm.xlu1 %1622, %v482_v28  }
 0x250   :  { %774 = vperm.xlu1 %1622, %v2105_v25  }
 0x254   :  { %784 = vperm.xlu1 %1622, %v2112_v29   ;;  %v367_v29 = vadd.s32 24, %v2009_v55 }
 0x256   :  { %v1084_v32 = vpop.xlane.xlu0 %1083  ;;  %vm406_vm9 = vcmp.ne.s32.totalorder %v367_v29, %v1845_v27 }
 0x257   :  { %v1115_v40 = vadd.f32 %v1084_v32, %v1067_v31  ;;  %v2275_v32 = vld [vmem:[#allocation2 + $0x78] sm:$0xff]  ;;  %vm2351_vm10 = vmand %vm406_vm9, %vm402_vm1 }
 0x258   :  { %794 = vperm.xlu1 %1622, %v2119_v35   ;;  %2784 = vst [vmem:[#allocation35_spill] sm:$0xff] %v2275_v32 }
 0x259   :  { %1131 = vst.msk [vmem:[#allocation5] sm:$0xff] %vm2750_vm2, %v1115_v40 }
 0x25a   :  { %v641_v60 = vpop.xlane.xlu0 %640 }
 0x25b   :  { %v2216_v49 = vmax.f32 %v2212_v43, %v641_v60 }
 0x25c   :  { %804 = vperm.xlu1 %1622, %v2126_v41   ;;  %v369_v41 = vadd.s32 40, %v2009_v55 }
 0x25d   :  { %2773 = vst [vmem:[#allocation24_spill] sm:$0xff] %v2216_v49  ;;  %1150 = vst.msk [vmem:[#allocation2 + $0x18] sm:$0xff] %vm2750_vm2, %v2216_v49  ;;  %779 = vperm.xlu0 %1623, %v2216_v49   ;;  %v376_v49 = vadd.s32 96, %v2009_v55 }
 0x25e   :  { %v645_v63 = vpop.xlane.xlu0 %644 }
 0x25f   :  { %v2227_v1 = vmax.f32 %v2219_v54, %v645_v63 }
 0x260   :  { %814 = vperm.xlu1 %1622, %v2133_v44  }
 0x261   :  { %2775 = vst [vmem:[#allocation26_spill] sm:$0xff] %v2227_v1  ;;  %1152 = vst.msk [vmem:[#allocation2 + $0x28] sm:$0xff] %vm2750_vm2, %v2227_v1  ;;  %789 = vperm.xlu0 %1623, %v2227_v1  }
 0x262   :  { %v649_v4 = vpop.xlane.xlu0 %648 }
 0x263   :  { %v2238_v2 = vmax.f32 %v2230_v5, %v649_v4 }
 0x264   :  { %824 = vperm.xlu1 %1622, %v2140_v50  }
 0x265   :  { %2777 = vst [vmem:[#allocation28_spill] sm:$0xff] %v2238_v2  ;;  %1154 = vst.msk [vmem:[#allocation2 + $0x38] sm:$0xff] %vm2750_vm2, %v2238_v2  ;;  %799 = vperm.xlu0 %1623, %v2238_v2   ;;  %v366_v2 = vadd.s32 16, %v2009_v55 }
 0x266   :  { %v653_v12 = vpop.xlane.xlu0 %652 }
 0x267   :  { %v2249_v10 = vmax.f32 %v2241_v36, %v653_v12  ;;  %v484_v12 = vld [vmem:[%s2715_s0 + $0x78] sm:$0xff]  ;;  %vm405_vm7 = vcmp.ne.s32.totalorder %v366_v2, %v1845_v27  ;;  %s1735_s0 = smov [#allocation6]  }
 0x268   :  { %834 = vperm.xlu1 %1622, %v2147_v57   ;;  %vm2330_vm8 = vmand %vm405_vm7, %vm402_vm1  ;;  %s1471_s23 = sshll.u32 %s1735_s0, 4  ;;  %s1472_s23 = int_to_ptr.vmem [resolvable:$true] %s1471_s23 }
 0x269   :  { %2779 = vst [vmem:[#allocation30_spill] sm:$0xff] %v2249_v10  ;;  %1156 = vst.msk [vmem:[#allocation2 + $0x48] sm:$0xff] %vm2750_vm2, %v2249_v10  ;;  %809 = vperm.xlu0 %1623, %v2249_v10   ;;  %s1708_s25 = scalar_lea.vmem %s1472_s23, 16  ;;  %s1712_s26 = scalar_lea.vmem %s1472_s23, 32 }
 0x26a   :  { %v657_v15 = vpop.xlane.xlu0 %656  ;;  %p1709_p0 = scmp.ne.s32.totalorder %s1472_s23, %s1708_s25  ;;  %p1713_p1 = scmp.lt.s32.totalorder %s1472_s23, %s1472_s23 }
 0x26b   :  { %v2263_v17 = vmax.f32 %v2252_v9, %v657_v15  ;;  %p1714_p2 = scmp.lt.s32.totalorder %s1712_s26, %s1708_s25 }
 0x26c   :  { %529 = vperm.xlu1 %1622, %v483_v14   ;;  %v2293_v14 = vpop.permute.xlu1 %490 }
 0x26d   :  { %2781 = vst [vmem:[#allocation32_spill] sm:$0xff] %v2263_v17  ;;  %1158 = vst.msk [vmem:[#allocation2 + $0x58] sm:$0xff] %vm2750_vm2, %v2263_v17  ;;  %819 = vperm.xlu0 %1623, %v2263_v17   ;;  %p1715_p3 = por %p1714_p2, %p1713_p1 }
 0x26e   :  { %v661_v28 = vpop.xlane.xlu0 %660 }
 0x26f   :  { %v2273_v31 = vmax.f32 %v2265_v20, %v661_v28  ;;  %p1716_p4 = pnand %p1715_p3, %p1709_p0 }
 0x270   :  { %v2295_v15 = vpop.permute.xlu1 %493 }
 0x271   :  { %2783 = vst [vmem:[#allocation34_spill] sm:$0xff] %v2273_v31  ;;  %1160 = vst.msk [vmem:[#allocation2 + $0x68] sm:$0xff] %vm2750_vm2, %v2273_v31  ;;  %829 = vperm.xlu0 %1623, %v2273_v31  }
 0x272   :  { %v665_v60 = vpop.xlane.xlu0 %664 }
 0x273   :  { %v2283_v63 = vmax.f32 %v2275_v32, %v665_v60 }
 0x274   :  { %v2297_v28 = vpop.permute.xlu1 %496 }
 0x275   :  { %2785 = vst [vmem:[#allocation36_spill] sm:$0xff] %v2283_v63  ;;  %1162 = vst.msk [vmem:[#allocation2 + $0x78] sm:$0xff] %vm2750_vm2, %v2283_v63  ;;  %839 = vperm.xlu0 %1623, %v2283_v63   ;;  %v746_v63 = vmul.f32 %v1643_v24, %v730_v47 }
 0x278   :  { %v2299_v60 = vpop.permute.xlu1 %499 }
 0x279   :  { %532 = vperm.xlu0 %1623, %v484_v12  }
 0x27a   :  { %v2317_v20 = vpop.permute.xlu0 %514 }
 0x27c   :  { %v2301_v40 = vpop.permute.xlu1 %502 }
 0x27e   :  { %v2322_v21 = vpop.permute.xlu0 %523 }
 0x280   :  { %v2303_v4 = vpop.permute.xlu1 %505 }
 0x282   :  { %v770_v47 = vpop.permute.xlu0 %769 }
 0x284   :  { %v2305_v6 = vpop.permute.xlu1 %508 }
 0x288   :  { %v2310_v13 = vpop.permute.xlu1 %511 }
 0x28c   :  { %v2312_v12 = vpop.permute.xlu1 %517 }
 0x290   :  { %v2314_v59 = vpop.permute.xlu1 %520 }
 0x2c8   :  { %v907_v32 = vpop.xlane.xlu1 %906 }
 0x2c9   :  { %v938_v31 = vadd.f32 %v907_v32, %v746_v63 }
 0x2cb   :  { %955 = vst.msk [vmem:[#allocation3] sm:$0xff] %vm2750_vm2, %v938_v31  ;;  %vm415_vm2 = vcmp.ne.s32.totalorder %v376_v49, %v1845_v27 }
 0x2cc   :  { %v2319_v1 = vpop.permute.xlu1 %526 }
 0x2d0   :  { %v775_v16 = vpop.permute.xlu1 %774 }
 0x2d1   :  { %v844_v19 = vsub.f32 %v1865_v39, %v775_v16 }
 0x2d3   :  { %v862_v34 = vmul.f32 1.442695, %v844_v19  ;;  %v2788_v19 = vmov 0.0  }
 0x2d4   :  { %v2324_v54 = vpop.permute.xlu1 %784  ;;  %v1505_v5 = vsel %vm2330_vm8, 1.0, %v2788_v19  ;;  %v1506_v29 = vsel %vm2351_vm10, 1.0, %v2788_v19 }
 0x2d5   :  { %1644 = vpow2.f32 %v862_v34 }
 0x2d8   :  { %v795_v24 = vpop.permute.xlu1 %794 }
 0x2dc   :  { %v805_v32 = vpop.permute.xlu1 %804  ;;  %v780_v63 = vpop.permute.xlu0 %779 }
 0x2dd   :  { %v845_v16 = vsub.f32 %v2150_v62, %v780_v63  ;;  %v850_v34 = vsub.f32 %v1997_v51, %v805_v32  ;;  %v843_v63 = vsub.f32 %v1860_v37, %v770_v47  ;;  %v374_v32 = vadd.s32 80, %v2009_v55 }
 0x2de   :  { %v372_v47 = vadd.s32 64, %v2009_v55 }
 0x2df   :  { %v1645_v45 = vpop.eup %1644  ;;  %v864_v50 = vmul.f32 1.442695, %v845_v16  ;;  %v874_v17 = vmul.f32 1.442695, %v850_v34  ;;  %v1182_v16 = vld [vmem:[#allocation3] sm:$0xff]  ;;  %vm413_vm11 = vcmp.ne.s32.totalorder %v374_v32, %v1845_v27 }
 0x2e0   :  { %v815_v10 = vpop.permute.xlu1 %814  ;;  %v2339_v2 = vpop.permute.xlu0 %789  ;;  %v892_v36 = vmul.f32 %v1645_v45, %v1505_v5  ;;  %v860_v45 = vmul.f32 1.442695, %v843_v63  ;;  %v848_v5 = vsub.f32 %v1975_v48, %v795_v24  ;;  %v365_v63 = vadd.s32 8, %v2009_v55  ;;  %vm2365_vm12 = vmand %vm413_vm11, %vm402_vm1 }
 0x2e1   :  { %v852_v26 = vsub.f32 %v2003_v53, %v815_v10  ;;  %1646 = vpow2.f32 %v864_v50  ;;  %vm411_vm13 = vcmp.ne.s32.totalorder %v372_v47, %v1845_v27  ;;  %v2793_v47 = vmov 0 }
 0x2e2   :  { %910 = vadd.xlane.f32.xlu0 %v892_v36  ;;  %v1198_v36 = vadd.f32 0.001, %v1182_v16  ;;  %v2791_v16 = vmov 0  ;;  %vm2380_vm14 = vmand %vm411_vm13, %vm402_vm1  ;;  %vm404_vm15 = vcmp.ne.s32.totalorder %v365_v63, %v1845_v27 }
 0x2e3   :  { %v878_v9 = vmul.f32 1.442695, %v852_v26  ;;  %v2792_v16 = vsel %vm2365_vm12, 4294967295, %v2791_v16  ;;  %v2794_v47 = vsel %vm2380_vm14, 4294967295, %v2793_v47  ;;  %vm2395_vm0 = vmand %vm404_vm15, %vm402_vm1 }
 0x2e4   :  { %v2344_v52 = vpop.permute.xlu1 %824  ;;  %v800_v57 = vpop.permute.xlu0 %799 }
 0x2e5   :  { %1648 = vpow2.f32 %v878_v9  ;;  %v849_v18 = vsub.f32 %v2163_v33, %v800_v57  ;;  %v1511_v57 = vsel %vm2380_vm14, 1.0, %v2788_v19 }
 0x2e6   :  { %1650 = vpow2.f32 %v874_v17  ;;  %v870_v17 = vmul.f32 1.442695, %v848_v5  ;;  %v846_v5 = vsub.f32 %v1877_v46, %v2324_v54  ;;  %v375_v54 = vadd.s32 88, %v2009_v55 }
 0x2e7   :  { %1652 = vpow2.f32 %v860_v45  ;;  %v1513_v45 = vsel %vm2365_vm12, 1.0, %v2788_v19 }
 0x2e8   :  { %v835_v10 = vpop.permute.xlu1 %834  ;;  %v810_v50 = vpop.permute.xlu0 %809  ;;  %1654 = vlog2.f32 %v1198_v36  ;;  %v370_v36 = vadd.s32 48, %v2009_v55  ;;  %vm414_vm4 = vcmp.ne.s32.totalorder %v375_v54, %v1845_v27 }
 0x2e9   :  { %v856_v9 = vsub.f32 %v2032_v61, %v835_v10  ;;  %v851_v24 = vsub.f32 %v2169_v0, %v810_v50  ;;  %1656 = vpow2.f32 %v870_v17  ;;  %v854_v17 = vsub.f32 %v2012_v56, %v2344_v52  ;;  %vm2417_vm6 = vmand %vm414_vm4, %vm402_vm1 }
 0x2ea   :  { %vm409_vm3 = vcmp.ne.s32.totalorder %v370_v36, %v1845_v27 }
 0x2eb   :  { %v1647_v34 = vpop.eup %1646  ;;  %v886_v50 = vmul.f32 1.442695, %v856_v9  ;;  %v876_v22 = vmul.f32 1.442695, %v851_v24  ;;  %v847_v9 = vsub.f32 %v2157_v3, %v2339_v2  ;;  %vm2409_vm5 = vmand %vm409_vm3, %vm402_vm1 }
 0x2ec   :  { %v820_v32 = vpop.permute.xlu0 %819  ;;  %v893_v30 = vmul.f32 %v1647_v34, %v1506_v29 }
 0x2ed   :  { %v853_v10 = vsub.f32 %v2175_v7, %v820_v32  ;;  %v868_v52 = vmul.f32 1.442695, %v847_v9  ;;  %v1509_v9 = vsel %vm2409_vm5, 1.0, %v2788_v19 }
 0x2ee   :  { %912 = vadd.xlane.f32.xlu1 %v893_v30  ;;  %v866_v30 = vmul.f32 1.442695, %v846_v5 }
 0x2ef   :  { %v1649_v35 = vpop.eup %1648  ;;  %v880_v38 = vmul.f32 1.442695, %v853_v10  ;;  %v378_v10 = vadd.s32 112, %v2009_v55 }
 0x2f0   :  { %v900_v29 = vmul.f32 %v1649_v35, %v1513_v45  ;;  %v1651_v34 = vpop.eup %1650  ;;  %v872_v35 = vmul.f32 1.442695, %v849_v18  ;;  %v830_v63 = vpop.permute.xlu0 %829  ;;  %v1504_v18 = vsel %vm2395_vm0, 1.0, %v2788_v19  ;;  %v368_v45 = vadd.s32 32, %v2009_v55 }
 0x2f1   :  { %1658 = vpow2.f32 %v880_v38  ;;  %v373_v38 = vadd.s32 72, %v2009_v55  ;;  %v898_v32 = vmul.f32 %v1651_v34, %v1511_v57  ;;  %v1653_v2 = vpop.eup %1652  ;;  %v855_v36 = vsub.f32 %v2181_v8, %v830_v63 }
 0x2f2   :  { %1660 = vpow2.f32 %v886_v50  ;;  %926 = vadd.xlane.f32.xlu0 %v900_v29  ;;  %v882_v50 = vmul.f32 1.442695, %v854_v17  ;;  %v1246_v29 = vld [vmem:[#allocation5] sm:$0xff]  ;;  %v371_v34 = vadd.s32 56, %v2009_v55  ;;  %v891_v57 = vmul.f32 %v1653_v2, %v1504_v18 }
 0x2f3   :  { %1662 = vpow2.f32 %v876_v22  ;;  %v1655_v22 = vpop.eup %1654  ;;  %vm412_vm7 = vcmp.ne.s32.totalorder %v373_v38, %v1845_v27  ;;  %vm417_vm9 = vcmp.ne.s32.totalorder %v378_v10, %v1845_v27  ;;  %v1514_v17 = vsel %vm2417_vm6, 1.0, %v2788_v19 }
 0x2f4   :  { %1664 = vpow2.f32 %v866_v30  ;;  %v1657_v30 = vpop.eup %1656  ;;  %v1326_v63 = vadd.f32 0.001, %v1246_v29  ;;  %vm407_vm11 = vcmp.ne.s32.totalorder %v368_v45, %v1845_v27  ;;  %vm2432_vm13 = vmand %vm412_vm7, %vm402_vm1  ;;  %v884_v2 = vmul.f32 1.442695, %v855_v36 }
 0x2f5   :  { %1666 = vpow2.f32 %v872_v35  ;;  %v1215_v35 = vmul.f32 0.6931472, %v1655_v22  ;;  %vm2442_vm15 = vmand %vm417_vm9, %vm402_vm1  ;;  %v2803_v22 = vmov 0  ;;  %vm410_vm3 = vcmp.ne.s32.totalorder %v371_v34, %v1845_v27 }
 0x2f6   :  { %922 = vadd.xlane.f32.xlu0 %v898_v32  ;;  %1668 = vpow2.f32 %v868_v52  ;;  %v2804_v22 = vsel %vm2442_vm15, 4294967295, %v2803_v22  ;;  %v840_v52 = vpop.permute.xlu0 %839  ;;  %v1512_v36 = vsel %vm2432_vm13, 1.0, %v2788_v19  ;;  %vm2457_vm4 = vmand %vm407_vm11, %vm402_vm1  ;;  %vm408_vm7 = vcmp.ne.s32.totalorder %v369_v41, %v1845_v27 }
 0x2f7   :  { %1670 = vpow2.f32 %v882_v50  ;;  %v1517_v50 = vsel %vm2442_vm15, 1.0, %v2788_v19  ;;  %v1278_v10 = vadd.f32 %v1215_v35, %v1166_v42  ;;  %v857_v34 = vsub.f32 %v2187_v11, %v840_v52  ;;  %vm2465_vm9 = vmand %vm410_vm3, %vm402_vm1 }
 0x2f8   :  { %1672 = vrcp.f32 %v1326_v63  ;;  %v377_v35 = vadd.s32 104, %v2009_v55  ;;  %v1507_v63 = vsel %vm2457_vm4, 1.0, %v2788_v19  ;;  %v1510_v41 = vsel %vm2465_vm9, 1.0, %v2788_v19  ;;  %vm2481_vm3 = vmand %vm408_vm7, %vm402_vm1 }
 0x2f9   :  { %1674 = vpow2.f32 %v884_v2  ;;  %vm539_vm11 = vcmp.eq.s32.totalorder %v2293_v14, %v2020_v58  ;;  %v888_v49 = vmul.f32 1.442695, %v857_v34  ;;  %vm2487_vm15 = vmand %vm415_vm2, %vm402_vm1  ;;  %vm541_vm7 = vcmp.eq.s32.totalorder %v2297_v28, %v2020_v58 }
 0x2fa   :  { %908 = vadd.xlane.f32.xlu0 %v891_v57  ;;  %v896_v57 = vmul.f32 %v1657_v30, %v1509_v9  ;;  %vm416_vm12 = vcmp.ne.s32.totalorder %v377_v35, %v1845_v27  ;;  %v1515_v14 = vsel %vm2487_vm15, 1.0, %v2788_v19  ;;  %vm555_vm2 = vmand %vm539_vm11, %vm2395_vm0  ;;  %v379_v35 = vadd.s32 120, %v2009_v55 }
 0x2fb   :  { %v1659_v32 = vpop.eup %1658  ;;  %1676 = vpow2.f32 %v888_v49  ;;  %vm2504_vm14 = vmand %vm416_vm12, %vm402_vm1  ;;  %v2510_v24 = vsel %vm555_vm2, 1.0, %v2788_v19  ;;  %vm543_vm12 = vcmp.eq.s32.totalorder %v2301_v40, %v2020_v58  ;;  %vm540_vm2 = vcmp.eq.s32.totalorder %v2295_v15, %v2020_v58 }
 0x2fc   :  { %v1661_v18 = vpop.eup %1660  ;;  %v901_v43 = vmul.f32 %v1659_v32, %v1514_v17  ;;  %v1294_v32 = vmul.f32 %v1278_v10, %v1246_v29  ;;  %v1516_v28 = vsel %vm2504_vm14, 1.0, %v2788_v19  ;;  %vm557_vm0 = vmand %vm541_vm7, %vm2351_vm10  ;;  %vm418_vm11 = vcmp.ne.s32.totalorder %v379_v35, %v1845_v27  ;;  %v2833_v35 = vld [vmem:[#allocation14_spill] sm:$0xff] }
 0x2fd   :  { %v1663_v44 = vpop.eup %1662  ;;  %vm559_vm10 = vmand %vm543_vm12, %vm2481_vm3  ;;  %vm545_vm7 = vcmp.eq.s32.totalorder %v2305_v6, %v2020_v58 }
 0x2fe   :  { %918 = vadd.xlane.f32.xlu0 %v896_v57  ;;  %928 = vadd.xlane.f32.xlu1 %v901_v43  ;;  %v1665_v9 = vpop.eup %1664  ;;  %v904_v43 = vmul.f32 %v1661_v18, %v1517_v50  ;;  %v899_v45 = vmul.f32 %v1663_v44, %v1512_v36  ;;  %v2811_v18 = vmov 0  ;;  %v1262_v57 = vld [vmem:[#allocation4] sm:$0xff]  ;;  %v1508_v36 = vsel %vm2481_vm3, 1.0, %v2788_v19  ;;  %vm561_vm3 = vmand %vm545_vm7, %vm2465_vm9 }
 0x2ff   :  { %v1667_v17 = vpop.eup %1666  ;;  %v2812_v18 = vsel %vm2487_vm15, 4294967295, %v2811_v18  ;;  %v894_v29 = vmul.f32 %v1665_v9, %v1507_v63  ;;  %v1310_v10 = vsub.f32 %v1262_v57, %v1294_v32  ;;  %v2813_v9 = vmov 0  ;;  %vm2533_vm15 = vmand %vm418_vm11, %vm402_vm1  ;;  %v732_v57 = vld [vmem:[#allocation3 + $0x10] sm:$0xff] }
 0x300   :  { %v1669_v2 = vpop.eup %1668  ;;  %v897_v52 = vmul.f32 %v1667_v17, %v1510_v41  ;;  %v2814_v9 = vsel %vm2504_vm14, 4294967295, %v2813_v9  ;;  %v988_v41 = vmul.f32 %v2510_v24, %v1860_v37  ;;  %v2523_v32 = vsel %vm557_vm0, 1.0, %v2788_v19  ;;  %vm556_vm0 = vmand %vm540_vm2, %vm2330_vm8 }
 0x301   :  { %v1671_v50 = vpop.eup %1670  ;;  %v990_v40 = vmul.f32 %v2523_v32, %v2150_v62  ;;  %vm2817_vm14 = vcmask 7168   ;;  %v2543_v44 = vsel %vm559_vm10, 1.0, %v2788_v19  ;;  %v1518_v27 = vsel %vm2533_vm15, 1.0, %v2788_v19 }
 0x302   :  { %934 = vadd.xlane.f32.xlu0 %v904_v43  ;;  %924 = vadd.xlane.f32.xlu1 %v899_v45  ;;  %v1673_v34 = vpop.eup %1672  ;;  %v902_v43 = vmul.f32 %v1671_v50, %v1515_v14  ;;  %v895_v45 = vmul.f32 %v1669_v2, %v1508_v36  ;;  %vm542_vm1 = vcmp.eq.s32.totalorder %v2299_v60, %v2020_v58  ;;  %v2559_v31 = vsel %vm561_vm3, 1.0, %v2788_v19  ;;  %v2828_v50 = vld [vmem:[#allocation16_spill] sm:$0xff]  ;;  %v2829_v14 = vld [vmem:[#allocation15_spill] sm:$0xff] }
 0x303   :  { %v1675_v17 = vpop.eup %1674  ;;  %v1358_v63 = vmul.f32 %v1673_v34, %v1310_v10  ;;  %vm547_vm8 = vcmp.eq.s32.totalorder %v2317_v20, %v2020_v58  ;;  %v992_v62 = vmul.f32 %v2543_v44, %v2157_v3  ;;  %v1522_v60 = vsel %vm556_vm0, 1.0, %v2788_v19 }
 0x304   :  { %v903_v55 = vmul.f32 %v1675_v17, %v1516_v28  ;;  %vm544_vm9 = vcmp.eq.s32.totalorder %v2303_v4, %v2020_v58  ;;  %vm563_vm12 = vmand %vm547_vm8, %vm2432_vm13  ;;  %vm549_vm11 = vcmp.eq.s32.totalorder %v2314_v59, %v2020_v58  ;;  %v994_v3 = vmul.f32 %v2559_v31, %v2163_v33  ;;  %v533_v33 = vpop.permute.xlu0 %532 }
 0x305   :  { %v1374_v49 = vmul.f32 -1.0, %v1358_v63  ;;  %v1677_v26 = vpop.eup %1676  ;;  %v989_v20 = vmul.f32 %v1522_v60, %v1865_v39  ;;  %v1529_v30 = vsel %vm563_vm12, 1.0, %v2788_v19  ;;  %vm546_vm13 = vcmp.eq.s32.totalorder %v2310_v13, %v2020_v58  ;;  %vm565_vm2 = vmand %vm549_vm11, %vm2417_vm6 }
 0x306   :  { %914 = vadd.xlane.f32.xlu0 %v894_v29  ;;  %920 = vadd.xlane.f32.xlu1 %v897_v52  ;;  %v905_v6 = vmul.f32 %v1677_v26, %v1518_v27  ;;  %vm551_vm10 = vcmp.eq.s32.totalorder %v2319_v1, %v2020_v58  ;;  %v996_v39 = vmul.f32 %v1529_v30, %v2169_v0  ;;  %v1531_v5 = vsel %vm565_vm2, 1.0, %v2788_v19  ;;  %v2837_v26 = vld [vmem:[#allocation31_spill] sm:$0xff] }
 0x307   :  { %v1422_v15 = vsel %vm2817_vm14, %v1374_v49, 0.0  ;;  %vm558_vm14 = vmand %vm542_vm1, %vm2457_vm4  ;;  %vm548_vm6 = vcmp.eq.s32.totalorder %v2312_v12, %v2020_v58  ;;  %vm2819_vm0 = vnez %v2814_v9  ;;  %vm553_vm3 = vcmp.eq.s32.totalorder %v533_v33, %v2020_v58  ;;  %v530_v12 = vpop.permute.xlu1 %529  ;;  %v2836_v49 = vld [vmem:[#allocation21_spill] sm:$0xff] }
 0x308   :  { %vm560_vm4 = vmand %vm544_vm9, %vm2409_vm5  ;;  %v1524_v4 = vsel %vm558_vm14, 1.0, %v2788_v19  ;;  %vm2818_vm5 = vnez %v2794_v47  ;;  %v998_v0 = vmul.f32 %v1531_v5, %v2175_v7  ;;  %vm2820_vm8 = vnez %v2792_v16  ;;  %v2842_v33 = vld [vmem:[#allocation29_spill] sm:$0xff] }
 0x309   :  { %v991_v59 = vmul.f32 %v1524_v4, %v1877_v46  ;;  %vm562_vm7 = vmand %vm546_vm13, %vm2818_vm5  ;;  %v1526_v13 = vsel %vm560_vm4, 1.0, %v2788_v19  ;;  %vm550_vm12 = vcmp.eq.s32.totalorder %v2322_v21, %v2020_v58  ;;  %vm2821_vm11 = vnez %v2812_v18 }
 0x30a   :  { %930 = vadd.xlane.f32.xlu0 %v902_v43  ;;  %916 = vadd.xlane.f32.xlu1 %v895_v45  ;;  %vm567_vm1 = vmand %vm551_vm10, %vm2819_vm0  ;;  %v993_v46 = vmul.f32 %v1526_v13, %v1975_v48  ;;  %v1528_v47 = vsel %vm562_vm7, 1.0, %v2788_v19  ;;  %vm2822_vm13 = vnez %v2804_v22  ;;  %v2826_v22 = vld [vmem:[#allocation24_spill] sm:$0xff]  ;;  %v690_v36 = vsub.f32 %v2829_v14, %v2828_v50 }
 0x30b   :  { %vm564_vm14 = vmand %vm548_vm6, %vm2820_vm8  ;;  %v1533_v1 = vsel %vm567_vm1, 1.0, %v2788_v19  ;;  %v995_v48 = vmul.f32 %v1528_v47, %v1997_v51  ;;  %vm2832_vm10 = vcmask 7168   ;;  %v741_v14 = vld [vmem:[#allocation3 + $0x58] sm:$0xff] }
 0x30c   :  { %vm569_vm9 = vmand %vm553_vm3, %vm2533_vm15  ;;  %v1000_v7 = vmul.f32 %v1533_v1, %v2181_v8  ;;  %v1530_v54 = vsel %vm564_vm14, 1.0, %v2788_v19  ;;  %vm552_vm15 = vcmp.eq.s32.totalorder %v530_v12, %v2020_v58  ;;  %v2823_v58 = vld [vmem:[#allocation18_spill] sm:$0xff]  ;;  %v714_v17 = vmul.f32 1.442695, %v690_v36 }
 0x30d   :  { %v1535_v16 = vsel %vm569_vm9, 1.0, %v2788_v19  ;;  %vm566_vm4 = vmand %vm550_vm12, %vm2821_vm11  ;;  %v997_v21 = vmul.f32 %v1530_v54, %v2003_v53  ;;  %v684_v53 = vsub.f32 %v2100_v23, %v2105_v25  ;;  %v2830_v23 = vld [vmem:[#allocation10_spill] sm:$0xff]  ;;  %v2831_v25 = vld [vmem:[#allocation9_spill] sm:$0xff] }
 0x30e   :  { %1005 = vadd.xlane.f32.xlu0 %v988_v41  ;;  %932 = vadd.xlane.f32.xlu1 %v903_v55  ;;  %v1002_v38 = vmul.f32 %v1535_v16, %v2187_v11  ;;  %v1532_v42 = vsel %vm566_vm4, 1.0, %v2788_v19  ;;  %vm568_vm2 = vmand %vm552_vm15, %vm2822_vm13  ;;  %v683_v45 = vsub.f32 %v2831_v25, %v2830_v23  ;;  %v736_v36 = vld [vmem:[#allocation3 + $0x30] sm:$0xff] }
 0x30f   :  { %v999_v51 = vmul.f32 %v1532_v42, %v2012_v56  ;;  %v1534_v8 = vsel %vm568_vm2, 1.0, %v2788_v19  ;;  %v702_v56 = vmul.f32 1.442695, %v684_v53  ;;  %v2825_v19 = vld [vmem:[#allocation23_spill] sm:$0xff]  ;;  %vm2845_vm5 = vmmov %vm2832_vm10 }
 0x310   :  { %v1001_v2 = vmul.f32 %v1534_v8, %v2032_v61  ;;  %v2824_v61 = vld [vmem:[#allocation17_spill] sm:$0xff]  ;;  %v2827_v18 = vsub.f32 %v2825_v19, %v2826_v22  ;;  %v700_v63 = vmul.f32 1.442695, %v683_v45  ;;  %vm2851_vm7 = vmmov %vm2845_vm5  ;;  %v2853_v19 = vld [vmem:[#allocation26_spill] sm:$0xff] }
 0x311   :  { %1678 = vpow2.f32 %v702_v56  ;;  %v692_v11 = vsub.f32 %v2824_v61, %v2823_v58  ;;  %v731_v56 = vld [vmem:[#allocation3 + $0x8] sm:$0xff]  ;;  %vm2855_vm6 = vmmov %vm2845_vm5 }
 0x312   :  { %1009 = vadd.xlane.f32.xlu0 %v990_v40  ;;  %1453 = vadd.xlane.f32.xlu1 %v1422_v15  ;;  %v704_v29 = vmul.f32 1.442695, %v2827_v18  ;;  %v733_v40 = vld [vmem:[#allocation3 + $0x18] sm:$0xff]  ;;  %vm2859_vm0 = vmmov %vm2845_vm5 }
 0x313   :  { %v718_v10 = vmul.f32 1.442695, %v692_v11  ;;  %v2838_v15 = vld [vmem:[#allocation32_spill] sm:$0xff]  ;;  %v2852_v11 = vld [vmem:[#allocation25_spill] sm:$0xff]  ;;  %vm2860_vm1 = vmmov %vm2859_vm0 }
 0x314   :  { %1680 = vpow2.f32 %v704_v29  ;;  %v2854_v22 = vsub.f32 %v2852_v11, %v2853_v19  ;;  %vm2861_vm3 = vmmov %vm2859_vm0 }
 0x315   :  { %1682 = vpow2.f32 %v718_v10  ;;  %vm2865_vm8 = vmmov %vm2859_vm0 }
 0x316   :  { %1013 = vadd.xlane.f32.xlu0 %v992_v62  ;;  %936 = vadd.xlane.f32.xlu1 %v905_v6  ;;  %1684 = vpow2.f32 %v714_v17  ;;  %v708_v18 = vmul.f32 1.442695, %v2854_v22  ;;  %vm2866_vm14 = vmmov %vm2859_vm0 }
 0x317   :  { %1686 = vpow2.f32 %v700_v63  ;;  %v739_v63 = vld [vmem:[#allocation3 + $0x48] sm:$0xff]  ;;  %vm2867_vm9 = vmmov %vm2859_vm0 }
 0x318   :  { %vm2868_vm12 = vmmov %vm2859_vm0 }
 0x319   :  { %vm2869_vm11 = vmmov %vm2859_vm0 }
 0x31a   :  { %1017 = vadd.xlane.f32.xlu0 %v994_v3  ;;  %1007 = vadd.xlane.f32.xlu1 %v989_v20  ;;  %v2841_v3 = vld [vmem:[#allocation11_spill] sm:$0xff]  ;;  %vm2870_vm4 = vmmov %vm2859_vm0 }
 0x31b   :  { %v1679_v52 = vpop.eup %1678  ;;  %vm2871_vm15 = vmmov %vm2859_vm0 }
 0x31c   :  { %v748_v34 = vmul.f32 %v1679_v52, %v732_v57  ;;  %vm2872_vm13 = vmmov %vm2859_vm0 }
 0x31d   :  { %vm2873_vm2 = vmmov %vm2859_vm0 }
 0x31e   :  { %1021 = vadd.xlane.f32.xlu0 %v996_v39  ;;  %1011 = vadd.xlane.f32.xlu1 %v991_v59  ;;  %v1681_v41 = vpop.eup %1680  ;;  %v2843_v39 = vld [vmem:[#allocation30_spill] sm:$0xff] }
 0x31f   :  { %v1683_v62 = vpop.eup %1682  ;;  %v749_v6 = vmul.f32 %v1681_v41, %v733_v40  ;;  %v2844_v59 = vsub.f32 %v2842_v33, %v2843_v39  ;;  %v744_v41 = vld [vmem:[#allocation3 + $0x70] sm:$0xff] }
 0x322   :  { %1025 = vadd.xlane.f32.xlu0 %v998_v0  ;;  %1015 = vadd.xlane.f32.xlu1 %v993_v46  ;;  %v1685_v46 = vpop.eup %1684 }
 0x326   :  { %1029 = vadd.xlane.f32.xlu0 %v1000_v7  ;;  %1019 = vadd.xlane.f32.xlu1 %v995_v48  ;;  %v2846_v7 = vld [vmem:[#allocation20_spill] sm:$0xff]  ;;  %v2847_v48 = vld [vmem:[#allocation19_spill] sm:$0xff] }
 0x32a   :  { %1033 = vadd.xlane.f32.xlu0 %v1002_v38  ;;  %1023 = vadd.xlane.f32.xlu1 %v997_v21  ;;  %v2848_v38 = vld [vmem:[#allocation27_spill] sm:$0xff]  ;;  %v2849_v21 = vld [vmem:[#allocation28_spill] sm:$0xff] }
 0x32e   :  { %1087 = vadd.xlane.f32.xlu0 %v1522_v60  ;;  %1027 = vadd.xlane.f32.xlu1 %v999_v51  ;;  %v2840_v60 = vld [vmem:[#allocation12_spill] sm:$0xff] }
 0x32f   :  { %v686_v20 = vsub.f32 %v2841_v3, %v2840_v60  ;;  %v2862_v60 = vld [vmem:[#allocation35_spill] sm:$0xff]  ;;  %v2863_v3 = vld [vmem:[#allocation36_spill] sm:$0xff] }
 0x331   :  { %v706_v12 = vmul.f32 1.442695, %v686_v20  ;;  %v2864_v20 = vsub.f32 %v2862_v60, %v2863_v3  ;;  %v984_v60 = vld [vmem:[#allocation4 + $0x68] sm:$0xff]  ;;  %v979_v3 = vld [vmem:[#allocation4 + $0x40] sm:$0xff] }
 0x332   :  { %1091 = vadd.xlane.f32.xlu0 %v1524_v4  ;;  %1031 = vadd.xlane.f32.xlu1 %v1001_v2  ;;  %v1687_v2 = vpop.eup %1686 }
 0x333   :  { %v747_v52 = vmul.f32 %v1687_v2, %v731_v56 }
 0x336   :  { %1095 = vadd.xlane.f32.xlu0 %v1526_v13  ;;  %1085 = vadd.xlane.f32.xlu1 %v2510_v24  ;;  %v2834_v24 = vld [vmem:[#allocation13_spill] sm:$0xff] }
 0x337   :  { %v688_v28 = vsub.f32 %v2834_v24, %v2833_v35 }
 0x339   :  { %v710_v55 = vmul.f32 1.442695, %v688_v28 }
 0x33a   :  { %1099 = vadd.xlane.f32.xlu0 %v1528_v47  ;;  %1089 = vadd.xlane.f32.xlu1 %v2523_v32  ;;  %v2835_v32 = vld [vmem:[#allocation22_spill] sm:$0xff]  ;;  %v738_v47 = vld [vmem:[#allocation3 + $0x40] sm:$0xff] }
 0x33b   :  { %v696_v37 = vsub.f32 %v2836_v49, %v2835_v32  ;;  %1688 = vpow2.f32 %v710_v55 }
 0x33e   :  { %1103 = vadd.xlane.f32.xlu0 %v1530_v54  ;;  %1093 = vadd.xlane.f32.xlu1 %v2543_v44  ;;  %v2839_v44 = vsub.f32 %v2837_v26, %v2838_v15 }
 0x340   :  { %v720_v27 = vmul.f32 1.442695, %v2839_v44 }
 0x342   :  { %1107 = vadd.xlane.f32.xlu0 %v1532_v42  ;;  %1097 = vadd.xlane.f32.xlu1 %v2559_v31  ;;  %v740_v31 = vld [vmem:[#allocation3 + $0x50] sm:$0xff]  ;;  %1690 = vpow2.f32 %v720_v27  ;;  %v2850_v42 = vsub.f32 %v2848_v38, %v2849_v21  ;;  %v737_v27 = vld [vmem:[#allocation3 + $0x38] sm:$0xff]  ;;  %v743_v38 = vld [vmem:[#allocation3 + $0x68] sm:$0xff] }
 0x343   :  { %v756_v0 = vmul.f32 %v1683_v62, %v740_v31  ;;  %v734_v62 = vld [vmem:[#allocation3 + $0x20] sm:$0xff] }
 0x344   :  { %v712_v51 = vmul.f32 1.442695, %v2850_v42 }
 0x345   :  { %v1689_v29 = vpop.eup %1688 }
 0x346   :  { %1111 = vadd.xlane.f32.xlu0 %v1534_v8  ;;  %1101 = vadd.xlane.f32.xlu1 %v1529_v30  ;;  %v726_v30 = vmul.f32 1.442695, %v696_v37  ;;  %v754_v8 = vmul.f32 %v1685_v46, %v738_v47  ;;  %v752_v17 = vmul.f32 %v1689_v29, %v736_v36  ;;  %v742_v46 = vld [vmem:[#allocation3 + $0x60] sm:$0xff] }
 0x348   :  { %1692 = vpow2.f32 %v726_v30  ;;  %v728_v30 = vmul.f32 1.442695, %v2864_v20 }
 0x34a   :  { %1105 = vadd.xlane.f32.xlu1 %v1531_v5  ;;  %v716_v5 = vmul.f32 1.442695, %v2844_v59 }
 0x34c   :  { %1694 = vpow2.f32 %v716_v5  ;;  %v1691_v57 = vpop.eup %1690 }
 0x34d   :  { %1696 = vpow2.f32 %v706_v12  ;;  %v757_v45 = vmul.f32 %v1691_v57, %v741_v14  ;;  %v976_v57 = vld [vmem:[#allocation4 + $0x28] sm:$0xff] }
 0x34e   :  { %1109 = vadd.xlane.f32.xlu1 %v1533_v1  ;;  %1698 = vpow2.f32 %v712_v51  ;;  %v972_v51 = vld [vmem:[#allocation4 + $0x8] sm:$0xff] }
 0x352   :  { %1113 = vadd.xlane.f32.xlu1 %v1535_v16  ;;  %v694_v16 = vsub.f32 %v2847_v48, %v2846_v7  ;;  %v1693_v25 = vpop.eup %1692 }
 0x353   :  { %v760_v40 = vmul.f32 %v1693_v25, %v744_v41  ;;  %v973_v25 = vld [vmem:[#allocation4 + $0x10] sm:$0xff]  ;;  %v980_v41 = vld [vmem:[#allocation4 + $0x48] sm:$0xff] }
 0x354   :  { %v722_v58 = vmul.f32 1.442695, %v694_v16 }
 0x356   :  { %1700 = vpow2.f32 %v722_v58  ;;  %v1695_v35 = vpop.eup %1694 }
 0x357   :  { %1702 = vpow2.f32 %v708_v18  ;;  %v1697_v49 = vpop.eup %1696  ;;  %v755_v37 = vmul.f32 %v1695_v35, %v739_v63  ;;  %v745_v18 = vld [vmem:[#allocation3 + $0x78] sm:$0xff] }
 0x358   :  { %v1699_v26 = vpop.eup %1698  ;;  %v750_v39 = vmul.f32 %v1697_v49, %v734_v62 }
 0x359   :  { %v753_v33 = vmul.f32 %v1699_v26, %v737_v27 }
 0x36f   :  { %v911_v9 = vpop.xlane.xlu0 %910 }
 0x370   :  { %v940_v43 = vadd.f32 %v911_v9, %v748_v34  ;;  %v2856_v34 = vld [vmem:[#allocation33_spill] sm:$0xff]  ;;  %v2857_v9 = vld [vmem:[#allocation34_spill] sm:$0xff] }
 0x372   :  { %957 = vst.msk [vmem:[#allocation3 + $0x10] sm:$0xff] %vm2832_vm10, %v940_v43  ;;  %v2858_v43 = vsub.f32 %v2856_v34, %v2857_v9  ;;  %vm2874_vm10 = vmmov %vm2859_vm0 }
 0x374   :  { %v724_v23 = vmul.f32 1.442695, %v2858_v43 }
 0x376   :  { %1704 = vpow2.f32 %v724_v23  ;;  %v978_v23 = vld [vmem:[#allocation4 + $0x38] sm:$0xff] }
 0x377   :  { %1706 = vpow2.f32 %v728_v30 }
 0x37b   :  { %v913_v4 = vpop.xlane.xlu1 %912 }
 0x37c   :  { %v941_v13 = vadd.f32 %v913_v4, %v749_v6  ;;  %v1701_v4 = vpop.eup %1700 }
 0x37d   :  { %v1703_v59 = vpop.eup %1702  ;;  %v758_v7 = vmul.f32 %v1701_v4, %v742_v46 }
 0x37e   :  { %958 = vst.msk [vmem:[#allocation3 + $0x18] sm:$0xff] %vm2845_vm5, %v941_v13  ;;  %vm2875_vm5 = vmmov %vm2859_vm0 }
 0x37f   :  { %v927_v1 = vpop.xlane.xlu0 %926 }
 0x380   :  { %v948_v54 = vadd.f32 %v927_v1, %v756_v0  ;;  %v735_v0 = vld [vmem:[#allocation3 + $0x28] sm:$0xff]  ;;  %v1705_v48 = vpop.eup %1704 }
 0x381   :  { %v751_v12 = vmul.f32 %v1703_v59, %v735_v0  ;;  %v1707_v11 = vpop.eup %1706  ;;  %v981_v59 = vld [vmem:[#allocation4 + $0x50] sm:$0xff] }
 0x382   :  { %965 = vst.msk [vmem:[#allocation3 + $0x50] sm:$0xff] %vm2851_vm7, %v948_v54  ;;  %v761_v14 = vmul.f32 %v1707_v11, %v745_v18  ;;  %vm2876_vm7 = vmmov %vm2859_vm0 }
 0x383   :  { %v923_v53 = vpop.xlane.xlu0 %922 }
 0x384   :  { %v946_v61 = vadd.f32 %v923_v53, %v754_v8  ;;  %v759_v8 = vmul.f32 %v1705_v48, %v743_v38  ;;  %v985_v38 = vld [vmem:[#allocation4 + $0x70] sm:$0xff] }
 0x386   :  { %963 = vst.msk [vmem:[#allocation3 + $0x40] sm:$0xff] %vm2855_vm6, %v946_v61  ;;  %v974_v61 = vld [vmem:[#allocation4 + $0x18] sm:$0xff]  ;;  %vm2877_vm6 = vmmov %vm2859_vm0 }
 0x387   :  { %v909_v50 = vpop.xlane.xlu0 %908 }
 0x388   :  { %v939_v10 = vadd.f32 %v909_v50, %v747_v52 }
 0x38a   :  { %956 = vst.msk [vmem:[#allocation3 + $0x8] sm:$0xff] %vm2859_vm0, %v939_v10 }
 0x38b   :  { %v929_v24 = vpop.xlane.xlu1 %928  ;;  %v919_v28 = vpop.xlane.xlu0 %918 }
 0x38c   :  { %v949_v55 = vadd.f32 %v929_v24, %v757_v45  ;;  %v944_v32 = vadd.f32 %v919_v28, %v752_v17 }
 0x38e   :  { %966 = vst.msk [vmem:[#allocation3 + $0x58] sm:$0xff] %vm2860_vm1, %v949_v55  ;;  %v975_v55 = vld [vmem:[#allocation4 + $0x20] sm:$0xff]  ;;  %vm2878_vm1 = vmmov %vm2859_vm0 }
 0x38f   :  { %961 = vst.msk [vmem:[#allocation3 + $0x30] sm:$0xff] %vm2861_vm3, %v944_v32  ;;  %v925_v15 = vpop.xlane.xlu1 %924  ;;  %v935_v44 = vpop.xlane.xlu0 %934  ;;  %vm2879_vm3 = vmmov %vm2859_vm0 }
 0x390   :  { %v947_v6 = vadd.f32 %v925_v15, %v755_v37  ;;  %v952_v31 = vadd.f32 %v935_v44, %v760_v40  ;;  %v982_v15 = vld [vmem:[#allocation4 + $0x58] sm:$0xff]  ;;  %v977_v44 = vld [vmem:[#allocation4 + $0x30] sm:$0xff] }
 0x392   :  { %964 = vst.msk [vmem:[#allocation3 + $0x48] sm:$0xff] %vm2865_vm8, %v947_v6  ;;  %vm2880_vm8 = vmmov %vm2859_vm0 }
 0x393   :  { %969 = vst.msk [vmem:[#allocation3 + $0x70] sm:$0xff] %vm2866_vm14, %v952_v31  ;;  %v921_v5 = vpop.xlane.xlu1 %920  ;;  %v915_v13 = vpop.xlane.xlu0 %914  ;;  %vm2881_vm14 = vmmov %vm2859_vm0 }
 0x394   :  { %v945_v1 = vadd.f32 %v921_v5, %v753_v33  ;;  %v942_v47 = vadd.f32 %v915_v13, %v750_v39  ;;  %v986_v39 = vld [vmem:[#allocation4 + $0x78] sm:$0xff] }
 0x396   :  { %962 = vst.msk [vmem:[#allocation3 + $0x38] sm:$0xff] %vm2867_vm9, %v945_v1  ;;  %vm2882_vm9 = vmmov %vm2859_vm0  ;;  %v1069_v1 = vld [vmem:[#allocation5 + $0x10] sm:$0xff] }
 0x397   :  { %959 = vst.msk [vmem:[#allocation3 + $0x20] sm:$0xff] %vm2868_vm12, %v942_v47  ;;  %v917_v16 = vpop.xlane.xlu1 %916  ;;  %v931_v54 = vpop.xlane.xlu0 %930  ;;  %v983_v47 = vld [vmem:[#allocation4 + $0x60] sm:$0xff]  ;;  %vm2883_vm12 = vmmov %vm2859_vm0 }
 0x398   :  { %v943_v21 = vadd.f32 %v917_v16, %v751_v12  ;;  %v950_v42 = vadd.f32 %v931_v54, %v758_v7  ;;  %v1071_v54 = vld [vmem:[#allocation5 + $0x20] sm:$0xff] }
 0x39a   :  { %960 = vst.msk [vmem:[#allocation3 + $0x28] sm:$0xff] %vm2869_vm11, %v943_v21  ;;  %vm2884_vm11 = vmmov %vm2859_vm0 }
 0x39b   :  { %967 = vst.msk [vmem:[#allocation3 + $0x60] sm:$0xff] %vm2870_vm4, %v950_v42  ;;  %v933_v2 = vpop.xlane.xlu1 %932  ;;  %v1006_v53 = vpop.xlane.xlu0 %1005  ;;  %vm2885_vm4 = vmmov %vm2859_vm0 }
 0x39c   :  { %v951_v56 = vadd.f32 %v933_v2, %v759_v8  ;;  %v1036_v58 = vadd.f32 %v1006_v53, %v972_v51  ;;  %v1073_v2 = vld [vmem:[#allocation5 + $0x30] sm:$0xff]  ;;  %v1068_v53 = vld [vmem:[#allocation5 + $0x8] sm:$0xff] }
 0x39e   :  { %968 = vst.msk [vmem:[#allocation3 + $0x68] sm:$0xff] %vm2871_vm15, %v951_v56  ;;  %vm2886_vm15 = vmmov %vm2859_vm0 }
 0x39f   :  { %1052 = vst.msk [vmem:[#allocation4 + $0x8] sm:$0xff] %vm2872_vm13, %v1036_v58  ;;  %v1010_v19 = vpop.xlane.xlu0 %1009  ;;  %v1454_v22 = vpop.xlane.xlu1 %1453  ;;  %vm2887_vm13 = vmmov %vm2859_vm0 }
 0x3a0   :  { %v1038_v29 = vadd.f32 %v1010_v19, %v974_v61  ;;  %v1455_v52 = vrot.slane %v1454_v22, 4  ;;  %v1075_v19 = vld [vmem:[#allocation5 + $0x40] sm:$0xff] }
 0x3a2   :  { %1054 = vst.msk [vmem:[#allocation4 + $0x18] sm:$0xff] %vm2873_vm2, %v1038_v29  ;;  %v1456_v50 = vadd.f32 %v1455_v52, %v1454_v22  ;;  %vm2888_vm2 = vmmov %vm2859_vm0  ;;  %v1070_v22 = vld [vmem:[#allocation5 + $0x18] sm:$0xff] }
 0x3a3   :  { %v1014_v36 = vpop.xlane.xlu0 %1013  ;;  %v937_v10 = vpop.xlane.xlu1 %936 }
 0x3a4   :  { %v1457_v34 = vrot.slane %v1456_v50, 2  ;;  %v1040_v9 = vadd.f32 %v1014_v36, %v976_v57  ;;  %v953_v43 = vadd.f32 %v937_v10, %v761_v14  ;;  %v1072_v14 = vld [vmem:[#allocation5 + $0x28] sm:$0xff] }
 0x3a6   :  { %1056 = vst.msk [vmem:[#allocation4 + $0x28] sm:$0xff] %vm2874_vm10, %v1040_v9  ;;  %v1458_v45 = vadd.f32 %v1457_v34, %v1456_v50  ;;  %vm2889_vm10 = vmmov %vm2859_vm0  ;;  %v1077_v50 = vld [vmem:[#allocation5 + $0x50] sm:$0xff] }
 0x3a7   :  { %970 = vst.msk [vmem:[#allocation3 + $0x78] sm:$0xff] %vm2875_vm5, %v953_v43  ;;  %v1018_v17 = vpop.xlane.xlu0 %1017  ;;  %v1008_v35 = vpop.xlane.xlu1 %1007  ;;  %vm2890_vm5 = vmmov %vm2859_vm0  ;;  %v1079_v43 = vld [vmem:[#allocation5 + $0x60] sm:$0xff] }
 0x3a8   :  { %v1042_v24 = vadd.f32 %v1018_v17, %v978_v23  ;;  %v1037_v28 = vadd.f32 %v1008_v35, %v973_v25  ;;  %v1459_v63 = vrot.slane %v1458_v45, 1  ;;  %v1074_v23 = vld [vmem:[#allocation5 + $0x38] sm:$0xff] }
 0x3aa   :  { %1058 = vst.msk [vmem:[#allocation4 + $0x38] sm:$0xff] %vm2876_vm7, %v1042_v24  ;;  %v1460_v32 = vadd.f32 %v1459_v63, %v1458_v45  ;;  %vm2891_vm7 = vmmov %vm2859_vm0  ;;  %v1081_v24 = vld [vmem:[#allocation5 + $0x70] sm:$0xff] }
 0x3ab   :  { %1053 = vst.msk [vmem:[#allocation4 + $0x10] sm:$0xff] %vm2877_vm6, %v1037_v28  ;;  %v1022_v49 = vpop.xlane.xlu0 %1021  ;;  %v1012_v37 = vpop.xlane.xlu1 %1011  ;;  %vm2892_vm6 = vmmov %vm2859_vm0  ;;  %v1076_v28 = vld [vmem:[#allocation5 + $0x48] sm:$0xff] }
 0x3ac   :  { %v1044_v40 = vadd.f32 %v1022_v49, %v980_v41  ;;  %v1039_v26 = vadd.f32 %v1012_v37, %v975_v55  ;;  %1616 = vpush %v1460_v32  ;;  %v1078_v49 = vld [vmem:[#allocation5 + $0x58] sm:$0xff] }
 0x3ae   :  { %1060 = vst.msk [vmem:[#allocation4 + $0x48] sm:$0xff] %vm2859_vm0, %v1044_v40 }
 0x3af   :  { %1055 = vst.msk [vmem:[#allocation4 + $0x20] sm:$0xff] %vm2878_vm1, %v1039_v26  ;;  %v1026_v27 = vpop.xlane.xlu0 %1025  ;;  %v1016_v62 = vpop.xlane.xlu1 %1015  ;;  %vm2893_vm1 = vmmov %vm2859_vm0  ;;  %v1080_v26 = vld [vmem:[#allocation5 + $0x68] sm:$0xff] }
 0x3b0   :  { %v1046_v6 = vadd.f32 %v1026_v27, %v982_v15  ;;  %v1041_v31 = vadd.f32 %v1016_v62, %v977_v44  ;;  %v1082_v27 = vld [vmem:[#allocation5 + $0x78] sm:$0xff] }
 0x3b2   :  { %1062 = vst.msk [vmem:[#allocation4 + $0x58] sm:$0xff] %vm2879_vm3, %v1046_v6  ;;  %vm2894_vm3 = vmmov %vm2859_vm0 }
 0x3b3   :  { %1057 = vst.msk [vmem:[#allocation4 + $0x30] sm:$0xff] %vm2880_vm8, %v1041_v31  ;;  %v1030_v20 = vpop.xlane.xlu0 %1029  ;;  %v1020_v30 = vpop.xlane.xlu1 %1019  ;;  %vm2895_vm8 = vmmov %vm2859_vm0 }
 0x3b4   :  { %v1048_v4 = vadd.f32 %v1030_v20, %v984_v60  ;;  %v1043_v33 = vadd.f32 %v1020_v30, %v979_v3 }
 0x3b6   :  { %1064 = vst.msk [vmem:[#allocation4 + $0x68] sm:$0xff] %vm2881_vm14, %v1048_v4  ;;  %vm2896_vm14 = vmmov %vm2859_vm0 }
 0x3b7   :  { %1059 = vst.msk [vmem:[#allocation4 + $0x40] sm:$0xff] %vm2882_vm9, %v1043_v33  ;;  %v1034_v5 = vpop.xlane.xlu0 %1033  ;;  %v1024_v13 = vpop.xlane.xlu1 %1023  ;;  %vm2897_vm9 = vmmov %vm2859_vm0 }
 0x3b8   :  { %v1050_v0 = vadd.f32 %v1034_v5, %v986_v39  ;;  %v1045_v46 = vadd.f32 %v1024_v13, %v981_v59 }
 0x3ba   :  { %1066 = vst.msk [vmem:[#allocation4 + $0x78] sm:$0xff] %vm2883_vm12, %v1050_v0  ;;  %vm2898_vm12 = vmmov %vm2859_vm0 }
 0x3bb   :  { %1061 = vst.msk [vmem:[#allocation4 + $0x50] sm:$0xff] %vm2884_vm11, %v1045_v46  ;;  %v1088_v12 = vpop.xlane.xlu0 %1087  ;;  %v1028_v7 = vpop.xlane.xlu1 %1027  ;;  %vm2899_vm11 = vmmov %vm2859_vm0 }
 0x3bc   :  { %v1117_v48 = vadd.f32 %v1088_v12, %v1069_v1  ;;  %v1047_v16 = vadd.f32 %v1028_v7, %v983_v47 }
 0x3be   :  { %1133 = vst.msk [vmem:[#allocation5 + $0x10] sm:$0xff] %vm2885_vm4, %v1117_v48 }
 0x3bf   :  { %1063 = vst.msk [vmem:[#allocation4 + $0x60] sm:$0xff] %vm2886_vm15, %v1047_v16  ;;  %v1092_v21 = vpop.xlane.xlu0 %1091  ;;  %v1032_v42 = vpop.xlane.xlu1 %1031 }
 0x3c0   :  { %v1119_v51 = vadd.f32 %v1092_v21, %v1071_v54  ;;  %v1049_v8 = vadd.f32 %v1032_v42, %v985_v38 }
 0x3c2   :  { %1135 = vst.msk [vmem:[#allocation5 + $0x20] sm:$0xff] %vm2887_vm13, %v1119_v51 }
 0x3c3   :  { %1065 = vst.msk [vmem:[#allocation4 + $0x70] sm:$0xff] %vm2888_vm2, %v1049_v8  ;;  %v1096_v56 = vpop.xlane.xlu0 %1095  ;;  %v1086_v58 = vpop.xlane.xlu1 %1085 }
 0x3c4   :  { %v1121_v61 = vadd.f32 %v1096_v56, %v1073_v2  ;;  %v1116_v11 = vadd.f32 %v1086_v58, %v1068_v53 }
 0x3c6   :  { %1137 = vst.msk [vmem:[#allocation5 + $0x30] sm:$0xff] %vm2889_vm10, %v1121_v61 }
 0x3c7   :  { %1132 = vst.msk [vmem:[#allocation5 + $0x8] sm:$0xff] %vm2890_vm5, %v1116_v11  ;;  %v1100_v18 = vpop.xlane.xlu0 %1099  ;;  %v1090_v29 = vpop.xlane.xlu1 %1089 }
 0x3c8   :  { %v1123_v52 = vadd.f32 %v1100_v18, %v1075_v19  ;;  %v1118_v57 = vadd.f32 %v1090_v29, %v1070_v22 }
 0x3ca   :  { %1139 = vst.msk [vmem:[#allocation5 + $0x40] sm:$0xff] %vm2891_vm7, %v1123_v52 }
 0x3cb   :  { %1134 = vst.msk [vmem:[#allocation5 + $0x18] sm:$0xff] %vm2892_vm6, %v1118_v57  ;;  %v1104_v36 = vpop.xlane.xlu0 %1103  ;;  %v1094_v10 = vpop.xlane.xlu1 %1093 }
 0x3cc   :  { %v1125_v34 = vadd.f32 %v1104_v36, %v1077_v50  ;;  %v1120_v9 = vadd.f32 %v1094_v10, %v1072_v14 }
 0x3ce   :  { %1141 = vst.msk [vmem:[#allocation5 + $0x50] sm:$0xff] %vm2859_vm0, %v1125_v34 }
 0x3cf   :  { %1136 = vst.msk [vmem:[#allocation5 + $0x28] sm:$0xff] %vm2893_vm1, %v1120_v9  ;;  %v1108_v25 = vpop.xlane.xlu0 %1107  ;;  %v1098_v45 = vpop.xlane.xlu1 %1097 }
 0x3d0   :  { %v1127_v17 = vadd.f32 %v1108_v25, %v1079_v43  ;;  %v1122_v35 = vadd.f32 %v1098_v45, %v1074_v23 }
 0x3d2   :  { %1143 = vst.msk [vmem:[#allocation5 + $0x60] sm:$0xff] %vm2894_vm3, %v1127_v17 }
 0x3d3   :  { %1138 = vst.msk [vmem:[#allocation5 + $0x38] sm:$0xff] %vm2895_vm8, %v1122_v35  ;;  %v1112_v63 = vpop.xlane.xlu0 %1111  ;;  %v1102_v41 = vpop.xlane.xlu1 %1101 }
 0x3d4   :  { %v1129_v55 = vadd.f32 %v1112_v63, %v1081_v24  ;;  %v1124_v32 = vadd.f32 %v1102_v41, %v1076_v28 }
 0x3d6   :  { %1145 = vst.msk [vmem:[#allocation5 + $0x70] sm:$0xff] %vm2896_vm14, %v1129_v55 }
 0x3d7   :  { %1140 = vst.msk [vmem:[#allocation5 + $0x48] sm:$0xff] %vm2897_vm9, %v1124_v32  ;;  %v1106_v37 = vpop.xlane.xlu1 %1105 }
 0x3d8   :  { %v1126_v40 = vadd.f32 %v1106_v37, %v1078_v49 }
 0x3da   :  { %1142 = vst.msk [vmem:[#allocation5 + $0x58] sm:$0xff] %vm2898_vm12, %v1126_v40 }
 0x3db   :  { %v1110_v15 = vpop.xlane.xlu1 %1109 }
 0x3dc   :  { %v1128_v44 = vadd.f32 %v1110_v15, %v1080_v26 }
 0x3dd   :  { %s1617_s24 = spop %1616 }
 0x3de   :  { %1144 = vst.msk [vmem:[#allocation5 + $0x68] sm:$0xff] %vm2899_vm11, %v1128_v44  ;;  %v1462_v62 = vstv %s1617_s24 }
 0x3df   :  { %1464 = vst [vmem:[#allocation6] sm:$0x1] %v1462_v62  ;;  %v1114_v6 = vpop.xlane.xlu1 %1113 }
 0x3e0   :  { %v1130_v31 = vadd.f32 %v1114_v6, %v1082_v27 }
 0x3e1   :  { %1719 = shalt.err (!%p1716_p4)
}
 0x3e2   :  { %s1720_s29 = scalar_lea.hbm %s2719_s4, 16 }
 0x3e3   :  { %p1721_p5 = scmp.ne.s32.totalorder %s2719_s4, %s1720_s29  ;;  %p1724_p6 = scmp.lt.u32.totalorder %s1720_s29, %s2719_s4 }
 0x3e5   :  { %p1726_p7 = pnand %p1724_p6, %p1721_p5 }
 0x3e7   :  { %1729 = shalt.err (!%p1726_p7)
}
 0x3e8   :  { %1474 = dma.vmem_to_hbm [thread:$0]  %s1472_s23, 16, %s2719_s4, [#allocation7]   ;;  %vm2900_vm4 = vmmov %vm2859_vm0 }
 0x3e9   :  { %1146 = vst.msk [vmem:[#allocation5 + $0x78] sm:$0xff] %vm2900_vm4, %v1130_v31 }
 0x3ea   :  { %1730 = dma.done.wait [#allocation7], 16  }
 0x3eb   :  { %1731 = vsyncadd [#allocation7], 4294967280 }
 0x3ec   :  { %1478 = vsyncpa [#allocation7], 1 }

</bundles_post_ra>
